<compile_context>
chip_gen: v5e
topology: v5e:2x2
jax: 0.10.0
libtpu: 0.0.40
codegen_flags: <defaults>
</compile_context>

<pallas_src>
import functools

import jax
import jax.numpy as jnp
from jax import lax
from jax.experimental import pallas as pl
from jax.experimental.pallas import tpu as pltpu


def _avc_kernel(ctx_ref, tr_ref, vid_ref, tgt_ref,
                wc_ref, bc_ref, wt_ref, bt_ref, wv_ref, bv_ref,
                wd_ref, bd_ref, out_ref, *, scale):
    """One grid step == TB batch elements.

    ctx_ref : (TB, S, E)   embedded comment/context tokens (bf16)
    tr_ref  : (TB, S, E)   embedded transcript tokens (bf16)
    vid_ref : (TB, S, VF)  video features (f32, cast to bf16 in-kernel)
    tgt_ref : (TB, 1, E)   embedded target token (bf16)
    wc/wt   : (E, Hp) bf16, wv: (VF, Hp) bf16, biases: (1, Hp) f32
    wd      : (2, Hp) f32 scorer (row0: attended hidden, row1: target)
    bd      : (1, 1)  f32 scorer bias
    out_ref : (1, TB) logits for this block (lane-dense row)
    scale   : static python float = 1/sqrt(true hidden size)
    """
    tb, s, e = ctx_ref.shape
    vf = vid_ref.shape[2]
    h = wc_ref.shape[1]

    ctx2d = ctx_ref[...].reshape(tb * s, e)                 # (TB*S, E) bf16
    tr2d = tr_ref[...].reshape(tb * s, e)                   # (TB*S, E) bf16
    tgt2d = tgt_ref[...].reshape(tb, e)                     # (TB, E)   bf16
    # bf16 cast of the dominant stream happens here (VPU, hidden under slack).
    vid2d = vid_ref[...].reshape(tb * s, vf).astype(jnp.bfloat16)

    # --- encoders: linear + tanh, f32 accumulation / post-MXU math ----------
    hc = jnp.tanh(jnp.dot(ctx2d, wc_ref[...],
                          preferred_element_type=jnp.float32) + bc_ref[...])
    htg = jnp.tanh(jnp.dot(tgt2d, wc_ref[...],
                           preferred_element_type=jnp.float32) + bc_ref[...])
    ht = jnp.tanh(jnp.dot(tr2d, wt_ref[...],
                          preferred_element_type=jnp.float32) + bt_ref[...])
    hv = jnp.tanh(jnp.dot(vid2d, wv_ref[...],
                          preferred_element_type=jnp.float32) + bv_ref[...])

    # --- sequence reductions (torch.sum(dim=1) / pooled transcript) ---------
    hidden_context = jnp.sum(hc.reshape(tb, s, h), axis=1)            # (TB, Hp)
    # TODO(synk): pooling-before-or-after-tanh of TranscriptEncoder ambiguous.
    hidden_transcript = jnp.mean(ht.reshape(tb, s, h), axis=1)        # (TB, Hp)
    hidden_video = jnp.sum(hv.reshape(tb, s, h), axis=1)              # (TB, Hp)

    # --- discriminator: target-query attention over the 3 hidden vectors ----
    s_c = jnp.sum(htg * hidden_context, axis=-1, keepdims=True) * scale
    s_t = jnp.sum(htg * hidden_transcript, axis=-1, keepdims=True) * scale
    s_v = jnp.sum(htg * hidden_video, axis=-1, keepdims=True) * scale

    m = jnp.maximum(jnp.maximum(s_c, s_t), s_v)
    e_c = jnp.exp(s_c - m)
    e_t = jnp.exp(s_t - m)
    e_v = jnp.exp(s_v - m)
    inv_denom = pl.reciprocal(e_c + e_t + e_v, approx=False)          # EUP
    attended = ((e_c * inv_denom) * hidden_context
                + (e_t * inv_denom) * hidden_transcript
                + (e_v * inv_denom) * hidden_video)                    # (TB, Hp)

    # --- scorer: lane-dense (1, TB) row via trans-B dot_general --------------
    dn = (((1,), (1,)), ((), ()))
    score = (lax.dot_general(wd_ref[0:1, :], attended, dn,
                             preferred_element_type=jnp.float32)
             + lax.dot_general(wd_ref[1:2, :], htg, dn,
                               preferred_element_type=jnp.float32)
             + bd_ref[0, 0])                                           # (1, TB)
    out_ref[...] = score


def _round_up(x, m):
    return (x + m - 1) // m * m


def _pad_to(x, shape):
    return jnp.pad(x, [(0, t - s) for s, t in zip(x.shape, shape)])


def _pick_batch_tile(b, block_b):
    """Largest multiple-of-8 divisor of b not exceeding block_b; else pad."""
    best = 0
    for cand in range(8, min(block_b, b) + 1, 8):
        if b % cand == 0:
            best = cand
    if best:
        return best
    return min(block_b, _round_up(b, 8))


def avc_discriminative_forward(ctx_ids, tr_ids, video, tgt_ids, params, *,
                               block_b=128):
    """ctx_ids, tr_ids: (B, S) int32 ids; video: (B, S, 2048) f32;
    tgt_ids: (B,) int32. Returns (B,) float32 logits."""
    emb_table = params["embeddings"]            # (V, E)
    b, s = ctx_ids.shape
    e = emb_table.shape[1]
    vfeat = video.shape[-1]
    h = params["wc"].shape[1]

    # Only the hidden (output) dim is lane-padded; zero-padding is exact
    # (padded weight columns are zero -> padded lanes stay zero everywhere).
    h_pad = _round_up(h, 128)

    tb = _pick_batch_tile(b, block_b)
    b_pad = _round_up(b, tb)
    nblk = b_pad // tb

    wc = _pad_to(params["wc"], (e, h_pad)).astype(jnp.bfloat16)
    wt = _pad_to(params["wt"], (e, h_pad)).astype(jnp.bfloat16)
    wv = _pad_to(params["wv"], (vfeat, h_pad)).astype(jnp.bfloat16)
    bc = _pad_to(params["bc"], (1, h_pad))
    bt = _pad_to(params["bt"], (1, h_pad))
    bv = _pad_to(params["bv"], (1, h_pad))
    wd = _pad_to(params["wd"], (2, h_pad))       # f32: scorer reads f32 acts
    bd = params["bd"]

    # Embedding lookups (gather) stay in plain JAX; bf16 table so the gathered
    # streams are half-width and unpadded in E.
    # TODO(synk): scalar-prefetched ids + in-kernel gather would remove the
    # (B,S,E) HBM round trip entirely.
    emb_bf = emb_table.astype(jnp.bfloat16)
    ctx_emb = jnp.take(emb_bf, ctx_ids, axis=0)               # (B, S, E) bf16
    tr_emb = jnp.take(emb_bf, tr_ids, axis=0)                 # (B, S, E) bf16
    tgt_emb = jnp.take(emb_bf, tgt_ids, axis=0)[:, None, :]   # (B, 1, E) bf16

    ctx_emb = _pad_to(ctx_emb, (b_pad, s, e))
    tr_emb = _pad_to(tr_emb, (b_pad, s, e))
    tgt_emb = _pad_to(tgt_emb, (b_pad, 1, e))
    video_p = _pad_to(video, (b_pad, s, vfeat))               # stays f32

    def resident(shape):
        # Constant block index -> single-buffered (no wasted double-buffer VMEM).
        return pl.BlockSpec(shape, lambda bb: tuple(0 for _ in shape),
                            pipeline_mode=pl.Buffered(buffer_count=1))

    kernel = functools.partial(_avc_kernel, scale=float(1.0 / (h ** 0.5)))

    out = pl.pallas_call(
        kernel,
        out_shape=jax.ShapeDtypeStruct((nblk, tb), jnp.float32),
        grid=(nblk,),
        in_specs=[
            pl.BlockSpec((tb, s, e), lambda bb: (bb, 0, 0)),       # ctx_emb bf16
            pl.BlockSpec((tb, s, e), lambda bb: (bb, 0, 0)),       # tr_emb  bf16
            pl.BlockSpec((tb, s, vfeat), lambda bb: (bb, 0, 0)),   # video   f32
            pl.BlockSpec((tb, 1, e), lambda bb: (bb, 0, 0)),       # tgt_emb bf16
            resident((e, h_pad)),     # wc (bf16)
            resident((1, h_pad)),     # bc
            resident((e, h_pad)),     # wt (bf16)
            resident((1, h_pad)),     # bt
            resident((vfeat, h_pad)), # wv (bf16)
            resident((1, h_pad)),     # bv
            resident((2, h_pad)),     # wd
            resident((1, 1)),         # bd
        ],
        out_specs=pl.BlockSpec((1, tb), lambda bb: (bb, 0)),
        compiler_params=pltpu.CompilerParams(
            dimension_semantics=("parallel",),
            vmem_limit_bytes=48 * 1024 * 1024),
    )(ctx_emb, tr_emb, video_p, tgt_emb,
      wc, bc, wt, bt, wv, bv, wd, bd)

    return out.reshape(b_pad)[:b]


def make_params(key, vocab, embedding_size, hidden_size, video_feat=2048):
    ks = jax.random.split(key, 8)
    scale = 0.05
    return {
        "embeddings": scale * jax.random.normal(ks[0], (vocab, embedding_size), jnp.float32),
        "wc": scale * jax.random.normal(ks[1], (embedding_size, hidden_size), jnp.float32),
        "bc": scale * jax.random.normal(ks[2], (1, hidden_size), jnp.float32),
        "wt": scale * jax.random.normal(ks[3], (embedding_size, hidden_size), jnp.float32),
        "bt": scale * jax.random.normal(ks[4], (1, hidden_size), jnp.float32),
        "wv": scale * jax.random.normal(ks[5], (video_feat, hidden_size), jnp.float32),
        "bv": scale * jax.random.normal(ks[6], (1, hidden_size), jnp.float32),
        "wd": scale * jax.random.normal(ks[7], (2, hidden_size), jnp.float32),
        "bd": jnp.zeros((1, 1), jnp.float32),
    }


if __name__ == "__main__":
    B, S, VOCAB, EMB, HID, VFEAT = 2, 8, 100, 32, 32, 2048

    key = jax.random.PRNGKey(0)
    k_p, k_ctx, k_tr, k_vid, k_tgt = jax.random.split(key, 5)

    params = make_params(k_p, VOCAB, EMB, HID, VFEAT)
    ctx_ids = jax.random.randint(k_ctx, (B, S), 0, VOCAB, dtype=jnp.int32)
    tr_ids = jax.random.randint(k_tr, (B, S), 0, VOCAB, dtype=jnp.int32)
    video = jax.random.normal(k_vid, (B, S, VFEAT), jnp.float32)
    tgt_ids = jax.random.randint(k_tgt, (B,), 0, VOCAB, dtype=jnp.int32)

    out = avc_discriminative_forward(ctx_ids, tr_ids, video, tgt_ids, params)
    jax.block_until_ready(out)
    assert out.shape == (B,) and out.dtype == jnp.float32
    assert bool(jnp.all(jnp.isfinite(out)))
    print("KERNEL_OK")
</pallas_src>

<mosaic_0001>
module attributes {stable_mosaic.version = 11 : i64} {
  func.func @_avc_kernel(%arg0: i32, %arg1: memref<8x8x32xbf16, #tpu.memory_space<vmem>>, %arg2: memref<8x8x32xbf16, #tpu.memory_space<vmem>>, %arg3: memref<8x8x2048xf32, #tpu.memory_space<vmem>>, %arg4: memref<8x1x32xbf16, #tpu.memory_space<vmem>>, %arg5: memref<32x128xbf16, #tpu.memory_space<vmem>>, %arg6: memref<1x128xf32, #tpu.memory_space<vmem>>, %arg7: memref<32x128xbf16, #tpu.memory_space<vmem>>, %arg8: memref<1x128xf32, #tpu.memory_space<vmem>>, %arg9: memref<2048x128xbf16, #tpu.memory_space<vmem>>, %arg10: memref<1x128xf32, #tpu.memory_space<vmem>>, %arg11: memref<2x128xf32, #tpu.memory_space<vmem>>, %arg12: memref<1x1xf32, #tpu.memory_space<vmem>>, %arg13: memref<1x8xf32, #tpu.memory_space<vmem>>) attributes {dimension_semantics = [#tpu.dimension_semantics<parallel>], iteration_bounds = array<i64: 1>, scalar_prefetch = 0 : i64, scratch_operands = 0 : i64, tpu.core_type = #tpu.core_type<tc>, window_params = [{transform_indices = @transform_0, window_bounds = array<i64: 8, 8, 32>}, {transform_indices = @transform_1, window_bounds = array<i64: 8, 8, 32>}, {transform_indices = @transform_2, window_bounds = array<i64: 8, 8, 2048>}, {transform_indices = @transform_3, window_bounds = array<i64: 8, 1, 32>}, {pipeline_mode = #tpu.pipeline_mode<synchronous>, transform_indices = @transform_4, window_bounds = array<i64: 32, 128>}, {pipeline_mode = #tpu.pipeline_mode<synchronous>, transform_indices = @transform_5, window_bounds = array<i64: 1, 128>}, {pipeline_mode = #tpu.pipeline_mode<synchronous>, transform_indices = @transform_6, window_bounds = array<i64: 32, 128>}, {pipeline_mode = #tpu.pipeline_mode<synchronous>, transform_indices = @transform_7, window_bounds = array<i64: 1, 128>}, {pipeline_mode = #tpu.pipeline_mode<synchronous>, transform_indices = @transform_8, window_bounds = array<i64: 2048, 128>}, {pipeline_mode = #tpu.pipeline_mode<synchronous>, transform_indices = @transform_9, window_bounds = array<i64: 1, 128>}, {pipeline_mode = #tpu.pipeline_mode<synchronous>, transform_indices = @transform_10, window_bounds = array<i64: 2, 128>}, {pipeline_mode = #tpu.pipeline_mode<synchronous>, transform_indices = @transform_11, window_bounds = array<i64: 1, 1>}, {transform_indices = @transform_12, window_bounds = array<i64: 1, 8>}]} {
    %c0 = arith.constant 0 : index
    %c0_0 = arith.constant 0 : index
    %c0_1 = arith.constant 0 : index
    %0 = vector.load %arg1[%c0, %c0_0, %c0_1] : memref<8x8x32xbf16, #tpu.memory_space<vmem>>, vector<8x8x32xbf16>
    %1 = vector.shape_cast %0 : vector<8x8x32xbf16> to vector<64x32xbf16>
    %c0_2 = arith.constant 0 : index
    %c0_3 = arith.constant 0 : index
    %c0_4 = arith.constant 0 : index
    %2 = vector.load %arg2[%c0_2, %c0_3, %c0_4] : memref<8x8x32xbf16, #tpu.memory_space<vmem>>, vector<8x8x32xbf16>
    %3 = vector.shape_cast %2 : vector<8x8x32xbf16> to vector<64x32xbf16>
    %c0_5 = arith.constant 0 : index
    %c0_6 = arith.constant 0 : index
    %c0_7 = arith.constant 0 : index
    %4 = vector.load %arg4[%c0_5, %c0_6, %c0_7] : memref<8x1x32xbf16, #tpu.memory_space<vmem>>, vector<8x1x32xbf16>
    %5 = vector.shape_cast %4 : vector<8x1x32xbf16> to vector<8x32xbf16>
    %c0_8 = arith.constant 0 : index
    %c0_9 = arith.constant 0 : index
    %c0_10 = arith.constant 0 : index
    %6 = vector.load %arg3[%c0_8, %c0_9, %c0_10] : memref<8x8x2048xf32, #tpu.memory_space<vmem>>, vector<8x8x2048xf32>
    %7 = vector.shape_cast %6 : vector<8x8x2048xf32> to vector<64x2048xf32>
    %8 = arith.truncf %7 : vector<64x2048xf32> to vector<64x2048xbf16>
    %c0_11 = arith.constant 0 : index
    %c0_12 = arith.constant 0 : index
    %9 = vector.load %arg5[%c0_11, %c0_12] : memref<32x128xbf16, #tpu.memory_space<vmem>>, vector<32x128xbf16>
    %cst = arith.constant dense<0.000000e+00> : vector<64x128xf32>
    %10 = tpu.matmul %1, %9, %cst {dimension_numbers = #tpu.dot_dimension_numbers<[1], [0], [0], [1], [0, 0, 1, 1], [], []>} : vector<64x32xbf16>, vector<32x128xbf16>, vector<64x128xf32> -> vector<64x128xf32>
    %c0_13 = arith.constant 0 : index
    %c0_14 = arith.constant 0 : index
    %11 = vector.load %arg6[%c0_13, %c0_14] : memref<1x128xf32, #tpu.memory_space<vmem>>, vector<1x128xf32>
    %12 = vector.broadcast %11 : vector<1x128xf32> to vector<64x128xf32>
    %13 = arith.addf %10, %12 : vector<64x128xf32>
    %14 = math.tanh %13 : vector<64x128xf32>
    %c0_15 = arith.constant 0 : index
    %c0_16 = arith.constant 0 : index
    %15 = vector.load %arg5[%c0_15, %c0_16] : memref<32x128xbf16, #tpu.memory_space<vmem>>, vector<32x128xbf16>
    %cst_17 = arith.constant dense<0.000000e+00> : vector<8x128xf32>
    %16 = tpu.matmul %5, %15, %cst_17 {dimension_numbers = #tpu.dot_dimension_numbers<[1], [0], [0], [1], [0, 0, 1, 1], [], []>} : vector<8x32xbf16>, vector<32x128xbf16>, vector<8x128xf32> -> vector<8x128xf32>
    %c0_18 = arith.constant 0 : index
    %c0_19 = arith.constant 0 : index
    %17 = vector.load %arg6[%c0_18, %c0_19] : memref<1x128xf32, #tpu.memory_space<vmem>>, vector<1x128xf32>
    %18 = vector.broadcast %17 : vector<1x128xf32> to vector<8x128xf32>
    %19 = arith.addf %16, %18 : vector<8x128xf32>
    %20 = math.tanh %19 : vector<8x128xf32>
    %c0_20 = arith.constant 0 : index
    %c0_21 = arith.constant 0 : index
    %21 = vector.load %arg7[%c0_20, %c0_21] : memref<32x128xbf16, #tpu.memory_space<vmem>>, vector<32x128xbf16>
    %cst_22 = arith.constant dense<0.000000e+00> : vector<64x128xf32>
    %22 = tpu.matmul %3, %21, %cst_22 {dimension_numbers = #tpu.dot_dimension_numbers<[1], [0], [0], [1], [0, 0, 1, 1], [], []>} : vector<64x32xbf16>, vector<32x128xbf16>, vector<64x128xf32> -> vector<64x128xf32>
    %c0_23 = arith.constant 0 : index
    %c0_24 = arith.constant 0 : index
    %23 = vector.load %arg8[%c0_23, %c0_24] : memref<1x128xf32, #tpu.memory_space<vmem>>, vector<1x128xf32>
    %24 = vector.broadcast %23 : vector<1x128xf32> to vector<64x128xf32>
    %25 = arith.addf %22, %24 : vector<64x128xf32>
    %26 = math.tanh %25 : vector<64x128xf32>
    %c0_25 = arith.constant 0 : index
    %c0_26 = arith.constant 0 : index
    %27 = vector.load %arg9[%c0_25, %c0_26] : memref<2048x128xbf16, #tpu.memory_space<vmem>>, vector<2048x128xbf16>
    %cst_27 = arith.constant dense<0.000000e+00> : vector<64x128xf32>
    %28 = tpu.matmul %8, %27, %cst_27 {dimension_numbers = #tpu.dot_dimension_numbers<[1], [0], [0], [1], [0, 0, 1, 1], [], []>} : vector<64x2048xbf16>, vector<2048x128xbf16>, vector<64x128xf32> -> vector<64x128xf32>
    %c0_28 = arith.constant 0 : index
    %c0_29 = arith.constant 0 : index
    %29 = vector.load %arg10[%c0_28, %c0_29] : memref<1x128xf32, #tpu.memory_space<vmem>>, vector<1x128xf32>
    %30 = vector.broadcast %29 : vector<1x128xf32> to vector<64x128xf32>
    %31 = arith.addf %28, %30 : vector<64x128xf32>
    %32 = math.tanh %31 : vector<64x128xf32>
    %33 = vector.shape_cast %14 : vector<64x128xf32> to vector<8x8x128xf32>
    %cst_30 = arith.constant dense<0.000000e+00> : vector<8x128xf32>
    %34 = vector.multi_reduction <add>, %33, %cst_30 [1] : vector<8x8x128xf32> to vector<8x128xf32>
    %35 = vector.shape_cast %26 : vector<64x128xf32> to vector<8x8x128xf32>
    %cst_31 = arith.constant dense<0.000000e+00> : vector<8x128xf32>
    %36 = vector.multi_reduction <add>, %35, %cst_31 [1] : vector<8x8x128xf32> to vector<8x128xf32>
    %cst_32 = arith.constant 8.000000e+00 : f32
    %37 = vector.broadcast %cst_32 : f32 to vector<8x128xf32>
    %38 = arith.divf %36, %37 : vector<8x128xf32>
    %39 = vector.shape_cast %32 : vector<64x128xf32> to vector<8x8x128xf32>
    %cst_33 = arith.constant dense<0.000000e+00> : vector<8x128xf32>
    %40 = vector.multi_reduction <add>, %39, %cst_33 [1] : vector<8x8x128xf32> to vector<8x128xf32>
    %41 = arith.mulf %20, %34 : vector<8x128xf32>
    %cst_34 = arith.constant dense<0.000000e+00> : vector<8xf32>
    %42 = vector.multi_reduction <add>, %41, %cst_34 [1] : vector<8x128xf32> to vector<8xf32>
    %43 = vector.shape_cast %42 : vector<8xf32> to vector<8x1xf32>
    %cst_35 = arith.constant 0.176776692 : f32
    %44 = vector.broadcast %cst_35 : f32 to vector<8x1xf32>
    %45 = arith.mulf %43, %44 : vector<8x1xf32>
    %46 = arith.mulf %20, %38 : vector<8x128xf32>
    %cst_36 = arith.constant dense<0.000000e+00> : vector<8xf32>
    %47 = vector.multi_reduction <add>, %46, %cst_36 [1] : vector<8x128xf32> to vector<8xf32>
    %48 = vector.shape_cast %47 : vector<8xf32> to vector<8x1xf32>
    %cst_37 = arith.constant 0.176776692 : f32
    %49 = vector.broadcast %cst_37 : f32 to vector<8x1xf32>
    %50 = arith.mulf %48, %49 : vector<8x1xf32>
    %51 = arith.mulf %20, %40 : vector<8x128xf32>
    %cst_38 = arith.constant dense<0.000000e+00> : vector<8xf32>
    %52 = vector.multi_reduction <add>, %51, %cst_38 [1] : vector<8x128xf32> to vector<8xf32>
    %53 = vector.shape_cast %52 : vector<8xf32> to vector<8x1xf32>
    %cst_39 = arith.constant 0.176776692 : f32
    %54 = vector.broadcast %cst_39 : f32 to vector<8x1xf32>
    %55 = arith.mulf %53, %54 : vector<8x1xf32>
    %56 = arith.maximumf %45, %50 : vector<8x1xf32>
    %57 = arith.maximumf %56, %55 : vector<8x1xf32>
    %58 = arith.subf %45, %57 : vector<8x1xf32>
    %59 = math.exp %58 : vector<8x1xf32>
    %60 = arith.subf %50, %57 : vector<8x1xf32>
    %61 = math.exp %60 : vector<8x1xf32>
    %62 = arith.subf %55, %57 : vector<8x1xf32>
    %63 = math.exp %62 : vector<8x1xf32>
    %64 = arith.addf %59, %61 : vector<8x1xf32>
    %65 = arith.addf %64, %63 : vector<8x1xf32>
    %66 = tpu.reciprocal %65 : vector<8x1xf32> -> vector<8x1xf32>
    %67 = arith.mulf %59, %66 : vector<8x1xf32>
    %68 = vector.broadcast %67 : vector<8x1xf32> to vector<8x128xf32>
    %69 = arith.mulf %68, %34 : vector<8x128xf32>
    %70 = arith.mulf %61, %66 : vector<8x1xf32>
    %71 = vector.broadcast %70 : vector<8x1xf32> to vector<8x128xf32>
    %72 = arith.mulf %71, %38 : vector<8x128xf32>
    %73 = arith.addf %69, %72 : vector<8x128xf32>
    %74 = arith.mulf %63, %66 : vector<8x1xf32>
    %75 = vector.broadcast %74 : vector<8x1xf32> to vector<8x128xf32>
    %76 = arith.mulf %75, %40 : vector<8x128xf32>
    %77 = arith.addf %73, %76 : vector<8x128xf32>
    %c0_40 = arith.constant 0 : index
    %c0_41 = arith.constant 0 : index
    %78 = vector.load %arg11[%c0_40, %c0_41] : memref<2x128xf32, #tpu.memory_space<vmem>>, vector<1x128xf32>
    %cst_42 = arith.constant dense<0.000000e+00> : vector<1x8xf32>
    %79 = tpu.matmul %78, %77, %cst_42 {dimension_numbers = #tpu.dot_dimension_numbers<[1], [1], [0], [0], [0, 0, 1, 0], [], []>} : vector<1x128xf32>, vector<8x128xf32>, vector<1x8xf32> -> vector<1x8xf32>
    %c1 = arith.constant 1 : index
    %c0_43 = arith.constant 0 : index
    %80 = vector.load %arg11[%c1, %c0_43] : memref<2x128xf32, #tpu.memory_space<vmem>>, vector<1x128xf32>
    %cst_44 = arith.constant dense<0.000000e+00> : vector<1x8xf32>
    %81 = tpu.matmul %80, %20, %cst_44 {dimension_numbers = #tpu.dot_dimension_numbers<[1], [1], [0], [0], [0, 0, 1, 0], [], []>} : vector<1x128xf32>, vector<8x128xf32>, vector<1x8xf32> -> vector<1x8xf32>
    %82 = arith.addf %79, %81 : vector<1x8xf32>
    %c0_45 = arith.constant 0 : index
    %c0_46 = arith.constant 0 : index
    %83 = vector.load %arg12[%c0_45, %c0_46] : memref<1x1xf32, #tpu.memory_space<vmem>>, vector<1x1xf32>
    %84 = vector.extract %83[0, 0] : f32 from vector<1x1xf32>
    %85 = vector.broadcast %84 : f32 to vector<1x8xf32>
    %86 = arith.addf %82, %85 : vector<1x8xf32>
    %c0_47 = arith.constant 0 : index
    %c0_48 = arith.constant 0 : index
    %87 = vector.load %arg13[%c0_47, %c0_48] : memref<1x8xf32, #tpu.memory_space<vmem>>, vector<1x8xf32>
    tpu.vector_store %arg13[%c0_47, %c0_48], %86 {strides = array<i32>} : memref<1x8xf32, #tpu.memory_space<vmem>>, vector<1x8xf32>,
    return
  }
  func.func @transform_0(%arg0: i32) -> (i32, i32, i32) {
    %c0_i32 = arith.constant 0 : i32
    %c0_i32_0 = arith.constant 0 : i32
    %c0_i32_1 = arith.constant 0 : i32
    return %arg0, %c0_i32, %c0_i32_0 : i32, i32, i32
  }
  func.func @transform_1(%arg0: i32) -> (i32, i32, i32) {
    %c0_i32 = arith.constant 0 : i32
    %c0_i32_0 = arith.constant 0 : i32
    %c0_i32_1 = arith.constant 0 : i32
    return %arg0, %c0_i32, %c0_i32_0 : i32, i32, i32
  }
  func.func @transform_2(%arg0: i32) -> (i32, i32, i32) {
    %c0_i32 = arith.constant 0 : i32
    %c0_i32_0 = arith.constant 0 : i32
    %c0_i32_1 = arith.constant 0 : i32
    return %arg0, %c0_i32, %c0_i32_0 : i32, i32, i32
  }
  func.func @transform_3(%arg0: i32) -> (i32, i32, i32) {
    %c0_i32 = arith.constant 0 : i32
    %c0_i32_0 = arith.constant 0 : i32
    %c0_i32_1 = arith.constant 0 : i32
    return %arg0, %c0_i32, %c0_i32_0 : i32, i32, i32
  }
  func.func @transform_4(%arg0: i32) -> (i32, i32) {
    %c0_i32 = arith.constant 0 : i32
    %c0_i32_0 = arith.constant 0 : i32
    %c0_i32_1 = arith.constant 0 : i32
    return %c0_i32, %c0_i32_0 : i32, i32
  }
  func.func @transform_5(%arg0: i32) -> (i32, i32) {
    %c0_i32 = arith.constant 0 : i32
    %c0_i32_0 = arith.constant 0 : i32
    %c0_i32_1 = arith.constant 0 : i32
    return %c0_i32, %c0_i32_0 : i32, i32
  }
  func.func @transform_6(%arg0: i32) -> (i32, i32) {
    %c0_i32 = arith.constant 0 : i32
    %c0_i32_0 = arith.constant 0 : i32
    %c0_i32_1 = arith.constant 0 : i32
    return %c0_i32, %c0_i32_0 : i32, i32
  }
  func.func @transform_7(%arg0: i32) -> (i32, i32) {
    %c0_i32 = arith.constant 0 : i32
    %c0_i32_0 = arith.constant 0 : i32
    %c0_i32_1 = arith.constant 0 : i32
    return %c0_i32, %c0_i32_0 : i32, i32
  }
  func.func @transform_8(%arg0: i32) -> (i32, i32) {
    %c0_i32 = arith.constant 0 : i32
    %c0_i32_0 = arith.constant 0 : i32
    %c0_i32_1 = arith.constant 0 : i32
    return %c0_i32, %c0_i32_0 : i32, i32
  }
  func.func @transform_9(%arg0: i32) -> (i32, i32) {
    %c0_i32 = arith.constant 0 : i32
    %c0_i32_0 = arith.constant 0 : i32
    %c0_i32_1 = arith.constant 0 : i32
    return %c0_i32, %c0_i32_0 : i32, i32
  }
  func.func @transform_10(%arg0: i32) -> (i32, i32) {
    %c0_i32 = arith.constant 0 : i32
    %c0_i32_0 = arith.constant 0 : i32
    %c0_i32_1 = arith.constant 0 : i32
    return %c0_i32, %c0_i32_0 : i32, i32
  }
  func.func @transform_11(%arg0: i32) -> (i32, i32) {
    %c0_i32 = arith.constant 0 : i32
    %c0_i32_0 = arith.constant 0 : i32
    %c0_i32_1 = arith.constant 0 : i32
    return %c0_i32, %c0_i32_0 : i32, i32
  }
  func.func @transform_12(%arg0: i32) -> (i32, i32) {
    %c0_i32 = arith.constant 0 : i32
    %c0_i32_0 = arith.constant 0 : i32
    return %arg0, %c0_i32 : i32, i32
  }
}

</mosaic_0001>

<bundles_post_ra>
// kernel: tpu_custom_call.1
= control target key start
LH: loop header
LB: loop body
LE: loop exit
PB: predicated region body
PF: predicated region fallthrough
CT: control target
= control target key end

     0   :  { %s3853_s0 = inlined_call_operand.hbm [shape: bf16[8,8,32], index: 0, kind: input, shape index: {}]   ;;  %s3854_s1 = inlined_call_operand.hbm [shape: bf16[8,8,32], index: 1, kind: input, shape index: {}]   ;;  %s3855_s2 = inlined_call_operand.hbm [shape: f32[8,8,2048], index: 2, kind: input, shape index: {}]   ;;  %s3856_s3 = inlined_call_operand.vmem [shape: bf16[8,1,32], index: 3, kind: input, shape index: {}]   ;;  %s3857_s4 = inlined_call_operand.hbm [shape: bf16[32,128], index: 4, kind: input, shape index: {}]   ;;  %s3858_s5 = inlined_call_operand.vmem [shape: f32[1,128], index: 5, kind: input, shape index: {}]   ;;  %s3859_s6 = inlined_call_operand.hbm [shape: bf16[32,128], index: 6, kind: input, shape index: {}]   ;;  %s3860_s7 = inlined_call_operand.vmem [shape: f32[1,128], index: 7, kind: input, shape index: {}]   ;;  %s3861_s8 = inlined_call_operand.hbm [shape: bf16[2048,128], index: 8, kind: input, shape index: {}]   ;;  %s3862_s9 = inlined_call_operand.vmem [shape: f32[1,128], index: 9, kind: input, shape index: {}]   ;;  %s3863_s10 = inlined_call_operand.vmem [shape: f32[2,128], index: 10, kind: input, shape index: {}]   ;;  %s3864_s11 = inlined_call_operand.<no memory space> [shape: f32[1,1], index: 11, kind: input, shape index: {}]   ;;  %s3865_s12 = inlined_call_operand.hbm [shape: f32[1,8], index: 12, kind: output, shape index: {}]  }
   0x1   :  { %v17_v0 = vstv %s3864_s11 }
   0x2   :  { %18 = vst [vmem:[#allocation2] sm:$0x1] %v17_v0 }
   0x3   :  { %19 = vsyncpa [#allocation4], 0 }
   0x4   :  { %20 = vsyncpa [#allocation7], 0 }
   0x5   :  { %21 = vsyncpa [#allocation10], 0 }
   0x6   :  { %22 = vsyncpa [#allocation13], 0 }
   0x7   :  { %23 = vsyncpa [#allocation5], 0  ;;  %s41_s25 = sshll.u32 %s3854_s1, 4  ;;  %s3409_s26 = smov [#allocation6]   ;;  %s42_s25 = int_to_ptr.hbm [resolvable:$true] %s41_s25 }
   0x8   :  { %s43_s27 = sshll.u32 %s3409_s26, 4  ;;  %s69_s30 = sshll.u32 %s3857_s4, 4  ;;  %s44_s27 = int_to_ptr.vmem [resolvable:$true] %s43_s27  ;;  %s70_s30 = int_to_ptr.hbm [resolvable:$true] %s69_s30 }
   0x9   :  { %s3410_s13 = smov 64   ;;  %s3411_s11 = smov 4  }
   0xa   :  { %49 = dma.hbm_to_vmem [thread:$0]  %s42_s25, 512, %s44_s27, [#allocation7], %s3410_s13, %s3410_s13, %s3411_s11  }
   0xb   :  { %s3412_s14 = smov [#allocation9]   ;;  %s28_s1 = sshll.u32 %s3853_s0, 4  ;;  %s29_s1 = int_to_ptr.hbm [resolvable:$true] %s28_s1 }
   0xc   :  { %s71_s15 = sshll.u32 %s3412_s14, 4  ;;  %s54_s19 = sshll.u32 %s3855_s2, 4  ;;  %s72_s15 = int_to_ptr.vmem [resolvable:$true] %s71_s15  ;;  %s55_s19 = int_to_ptr.hbm [resolvable:$true] %s54_s19 }
   0xd   :  { %77 = dma.hbm_to_vmem [thread:$0]  %s70_s30, 256, %s72_s15, [#allocation10], %s3410_s13, %s3410_s13, %s3411_s11  }
   0xe   :  { %s3413_s20 = smov [#allocation3]   ;;  %s3414_s22 = smov [#allocation8]  }
   0xf   :  { %s30_s21 = sshll.u32 %s3413_s20, 4  ;;  %s56_s0 = sshll.u32 %s3414_s22, 4  ;;  %s31_s21 = int_to_ptr.vmem [resolvable:$true] %s30_s21  ;;  %s57_s0 = int_to_ptr.vmem [resolvable:$true] %s56_s0 }
  0x10   :  { %36 = dma.hbm_to_vmem [thread:$0]  %s29_s1, 512, %s31_s21, [#allocation4], %s3410_s13, %s3410_s13, %s3411_s11  }
  0x11   :  { %s3415_s23 = smov 2048   ;;  %s3416_s24 = smov 128  }
  0x12   :  { %62 = dma.hbm_to_vmem [thread:$0]  %s55_s19, 16384, %s57_s0, [#allocation7], %s3415_s23, %s3415_s23, %s3416_s24  }
  0x13   :  { %s84_s27 = sshll.u32 %s3859_s6, 4  ;;  %s3417_s2 = smov [#allocation11]   ;;  %s85_s27 = int_to_ptr.hbm [resolvable:$true] %s84_s27 }
  0x14   :  { %s86_s28 = sshll.u32 %s3417_s2, 4  ;;  %s99_s14 = sshll.u32 %s3861_s8, 4  ;;  %s87_s28 = int_to_ptr.vmem [resolvable:$true] %s86_s28  ;;  %s100_s14 = int_to_ptr.hbm [resolvable:$true] %s99_s14 }
  0x15   :  { %92 = dma.hbm_to_vmem [thread:$0]  %s85_s27, 256, %s87_s28, [#allocation10], %s3410_s13, %s3410_s13, %s3411_s11  }
  0x16   :  { %s3418_s15 = smov [#allocation12]  }
  0x17   :  { %s101_s16 = sshll.u32 %s3418_s15, 4  ;;  %s102_s16 = int_to_ptr.vmem [resolvable:$true] %s101_s16 }
  0x18   :  { %107 = dma.hbm_to_vmem [thread:$0]  %s100_s14, 16384, %s102_s16, [#allocation13], %s3410_s13, %s3410_s13, %s3411_s11  }
  0x19   :  { %3399 = dma.done.wait [#allocation4], 512  }
  0x1a   :  { %3400 = vsyncadd [#allocation4], 4294966784 }
  0x1b   :  { %3401 = dma.done.wait [#allocation7], 16896  }
  0x1c   :  { %3402 = vsyncadd [#allocation7], 4294950400 }
  0x1d   :  { %3403 = dma.done.wait [#allocation10], 512  }
  0x1e   :  { %3404 = vsyncadd [#allocation10], 4294966784 }
  0x1f   :  { %3405 = dma.done.wait [#allocation13], 16384  }
  0x20   :  { %3406 = vsyncadd [#allocation13], 4294950912  ;;  %v3013_v1 = vld [vmem:[#allocation9 + $0x8] sm:$0xff]  ;;  %v3015_v2 = vld [vmem:[#allocation11 + $0x8] sm:$0xff]  ;;  %vm395_vm0 = vcmask 261120   ;;  %vm486_vm1 = vcmask 1041409  }
  0x21   :  { %414 = vmatpush.bf16.msra.mxu0 %v3013_v1  ;;  %3144 = vmatpush.bf16.msra.mxu3 %v3013_v1  ;;  %v3012_v3 = vld [vmem:[#allocation9] sm:$0xff]  ;;  %v3014_v4 = vld [vmem:[#allocation11] sm:$0xff]  ;;  %v3023_v5 = vld [vmem:[#allocation12 + $0x38] sm:$0xff]  ;;  %vm489_vm2 = vcmask 1042434   ;;  %vm492_vm3 = vcmask 1043459   ;;  %vm495_vm4 = vcmask 1044484  }
  0x22   :  { %582 = vmatpush.bf16.msra.mxu2 %v3015_v2  ;;  %516 = vmatpush.bf16.msra.mxu1 %v3013_v1  ;;  %v3039_v6 = vld [vmem:[#allocation12 + $0xb8] sm:$0xff]  ;;  %v3004_v7 = vld [vmem:[#allocation3] sm:$0xff]  ;;  %v3006_v8 = vld [vmem:[#allocation3 + $0x10] sm:$0xff]  ;;  %vm498_vm5 = vcmask 1045509   ;;  %vm501_vm6 = vcmask 1046534   ;;  %vm504_vm7 = vcmask 1047559  }
  0x23   :  { %v3008_v9 = vld [vmem:[#allocation6] sm:$0xff]  ;;  %v3022_v10 = vld [vmem:[#allocation12 + $0x30] sm:$0xff]  ;;  %v3047_v12 = vld [vmem:[#allocation12 + $0xf8] sm:$0xff]  ;;  %s3420_s15 = smov [#allocation14]   ;;  %s2422_s13 = sshll.u32 %s3865_s12, 4  ;;  %vm2413_vm13 = vcmask 57344   ;;  %s2423_s13 = int_to_ptr.hbm [resolvable:$true] %s2422_s13 }
  0x24   :  { %v3038_v11 = vld [vmem:[#allocation12 + $0xb0] sm:$0xff]  ;;  %v3031_v13 = vld [vmem:[#allocation12 + $0x78] sm:$0xff]  ;;  %v3021_v14 = vld [vmem:[#allocation12 + $0x28] sm:$0xff]  ;;  %s2420_s16 = sshll.u32 %s3420_s15, 4  ;;  %s2421_s16 = int_to_ptr.vmem [resolvable:$true] %s2420_s16 }
  0x25   :  { %415 = vmatpush.bf16.msra.mxu0 %v3012_v3  ;;  %3145 = vmatpush.bf16.msra.mxu3 %v3012_v3  ;;  %v155_v15 = vld [vmem:[%s3856_s3] sm:$0x1]  ;;  %v3037_v16 = vld [vmem:[#allocation12 + $0xa8] sm:$0xff]  ;;  %v3020_v17 = vld [vmem:[#allocation12 + $0x20] sm:$0xff] }
  0x26   :  { %583 = vmatpush.bf16.msra.mxu2 %v3014_v4  ;;  %517 = vmatpush.bf16.msra.mxu1 %v3012_v3  ;;  %446 = vst [vmem:[#allocation1] ss:$9 sm:$0xff] %v155_v15  ;;  %v3036_v18 = vld [vmem:[#allocation12 + $0xa0] sm:$0xff]  ;;  %v156_v19 = vld [vmem:[%s3856_s3 + $0x1] sm:$0x1]  ;;  %v3005_v23 = vld [vmem:[#allocation3 + $0x8] sm:$0xff] }
  0x27   :  { %v3019_v20 = vld [vmem:[#allocation12 + $0x18] sm:$0xff]  ;;  %v3009_v25 = vld [vmem:[#allocation6 + $0x8] sm:$0xff]  ;;  %v3018_v26 = vld [vmem:[#allocation12 + $0x10] sm:$0xff] }
  0x28   :  { %2459 = vmatmul.msk.bf16.vlgmr.msra.gmra.mxu0 %vm395_vm0, %v3004_v7  ;;  %2461 = vmatmul.msk.bf16.vlgmr.msra.gmra.mxu3 %vm395_vm0, %v3006_v8  ;;  %v3035_v21 = vld [vmem:[#allocation12 + $0x98] sm:$0xff]  ;;  %v3034_v27 = vld [vmem:[#allocation12 + $0x90] sm:$0xff]  ;;  %v3017_v30 = vld [vmem:[#allocation12 + $0x8] sm:$0xff] }
  0x29   :  { %1641 = vmatpush.bf16.msrb.mxu3 %v3023_v5  ;;  %1699 = vmatpush.bf16.msrb.mxu0 %v3039_v6  ;;  %v3007_v24 = vld [vmem:[#allocation3 + $0x18] sm:$0xff]  ;;  %v3046_v28 = vld [vmem:[#allocation12 + $0xf0] sm:$0xff]  ;;  %v3033_v32 = vld [vmem:[#allocation12 + $0x88] sm:$0xff] }
  0x2a   :  { %2488 = vmatmul.msk.bf16.vlgmr.msra.gmra.mxu2 %vm395_vm0, %v3008_v9  ;;  %1670 = vmatpush.bf16.msrb.mxu1 %v3031_v13  ;;  %v3030_v29 = vld [vmem:[#allocation12 + $0x70] sm:$0xff]  ;;  %v157_v31 = vld [vmem:[%s3856_s3 + $0x2] sm:$0x1]  ;;  %v3045_v33 = vld [vmem:[#allocation12 + $0xe8] sm:$0xff] }
  0x2b   :  { %1728 = vmatpush.bf16.msrb.mxu2 %v3047_v12  ;;  %v3029_v34 = vld [vmem:[#allocation12 + $0x68] sm:$0xff]  ;;  %v3016_v36 = vld [vmem:[#allocation12] sm:$0xff]  ;;  %v165_v42 = vld [vmem:[#allocation8 + $0x10] sm:$0xff] }
  0x2c   :  { %v3032_v37 = vld [vmem:[#allocation12 + $0x80] sm:$0xff]  ;;  %v181_v43 = vld [vmem:[#allocation8 + $0x90] sm:$0xff]  ;;  %v158_v44 = vld [vmem:[%s3856_s3 + $0x3] sm:$0x1] }
  0x2d   :  { %1642 = vmatpush.bf16.msrb.mxu3 %v3022_v10  ;;  %1700 = vmatpush.bf16.msrb.mxu0 %v3038_v11  ;;  %v3531_v22 = vld [vmem:[#allocation1] sm:$0xf]  ;;  %v3044_v38 = vld [vmem:[#allocation12 + $0xe0] sm:$0xff]  ;;  %v293_v47 = vpack.c.bf16 %v181_v43, %v165_v42  ;;  %v159_v50 = vld [vmem:[%s3856_s3 + $0x4] sm:$0x1] }
  0x2e   :  { %450 = vst [vmem:[#allocation1] ss:$9 sm:$0xff] %v156_v19  ;;  %1671 = vmatpush.bf16.msrb.mxu1 %v3030_v29  ;;  %v163_v39 = vld [vmem:[#allocation8] sm:$0xff]  ;;  %v3043_v45 = vld [vmem:[#allocation12 + $0xd8] sm:$0xff]  ;;  %v3010_v49 = vld [vmem:[#allocation6 + $0x10] sm:$0xff]  ;;  %v477_v11 = vunpack.c.l.b16 %v3531_v22 }
  0x2f   :  { %1729 = vmatpush.bf16.msrb.mxu2 %v3046_v28  ;;  %v3028_v40 = vld [vmem:[#allocation12 + $0x60] sm:$0xff]  ;;  %v197_v54 = vld [vmem:[#allocation8 + $0x110] sm:$0xff]  ;;  %v160_v56 = vld [vmem:[%s3856_s3 + $0x5] sm:$0x1] }
  0x30   :  { %v179_v41 = vld [vmem:[#allocation8 + $0x80] sm:$0xff]  ;;  %v213_v55 = vld [vmem:[#allocation8 + $0x190] sm:$0xff]  ;;  %v3027_v57 = vld [vmem:[#allocation12 + $0x58] sm:$0xff] }
  0x31   :  { %1643 = vmatpush.bf16.msrb.mxu3 %v3021_v14  ;;  %1701 = vmatpush.bf16.msrb.mxu0 %v3037_v16  ;;  %v291_v46 = vpack.c.bf16 %v179_v41, %v163_v39  ;;  %v195_v52 = vld [vmem:[#allocation8 + $0x100] sm:$0xff]  ;;  %v309_v59 = vpack.c.bf16 %v213_v55, %v197_v54  ;;  %v3042_v61 = vld [vmem:[#allocation12 + $0xd0] sm:$0xff]  ;;  %v3055_v62 = vld [vmem:[#allocation12 + $0x138] sm:$0xff] }
  0x32   :  { %1672 = vmatpush.bf16.msrb.mxu1 %v3029_v34  ;;  %v211_v53 = vld [vmem:[#allocation8 + $0x180] sm:$0xff]  ;;  %v3011_v63 = vld [vmem:[#allocation6 + $0x18] sm:$0xff]  ;;  %v3026_v1 = vld [vmem:[#allocation12 + $0x50] sm:$0xff] }
  0x33   :  { %1730 = vmatpush.bf16.msrb.mxu2 %v3045_v33  ;;  %v307_v58 = vpack.c.bf16 %v211_v53, %v195_v52  ;;  %v3071_v0 = vld [vmem:[#allocation12 + $0x1b8] sm:$0xff]  ;;  %v3041_v2 = vld [vmem:[#allocation12 + $0xc8] sm:$0xff]  ;;  %v3054_v3 = vld [vmem:[#allocation12 + $0x130] sm:$0xff] }
  0x34   :  { %v3070_v5 = vld [vmem:[#allocation12 + $0x1b0] sm:$0xff]  ;;  %v3025_v6 = vld [vmem:[#allocation12 + $0x48] sm:$0xff]  ;;  %v161_v7 = vld [vmem:[%s3856_s3 + $0x6] sm:$0x1] }
  0x35   :  { %1644 = vmatpush.bf16.msrb.mxu3 %v3020_v17  ;;  %1702 = vmatpush.bf16.msrb.mxu0 %v3036_v18  ;;  %v3539_v35 = vld [vmem:[#allocation1] sm:$0xf]  ;;  %v3040_v9 = vld [vmem:[#allocation12 + $0xc0] sm:$0xff]  ;;  %v3053_v10 = vld [vmem:[#allocation12 + $0x128] sm:$0xff] }
  0x36   :  { %454 = vst [vmem:[#allocation1] ss:$9 sm:$0xff] %v157_v31  ;;  %1673 = vmatpush.bf16.msrb.mxu1 %v3028_v40  ;;  %v478_v4 = vunpack.c.l.b16 %v3539_v35  ;;  %v3069_v13 = vld [vmem:[#allocation12 + $0x1a8] sm:$0xff]  ;;  %v3024_v16 = vld [vmem:[#allocation12 + $0x40] sm:$0xff]  ;;  %v166_v29 = vld [vmem:[#allocation8 + $0x18] sm:$0xff] }
  0x37   :  { %1731 = vmatpush.bf16.msrb.mxu2 %v3044_v38  ;;  %v3052_v18 = vld [vmem:[#allocation12 + $0x120] sm:$0xff]  ;;  %v3050_v41 = vld [vmem:[#allocation12 + $0x110] sm:$0xff] }
  0x38   :  { %2460 = vmatmul.msk.bf16.gmra.mxu0 %vm395_vm0, %v3005_v23  ;;  %2462 = vmatmul.msk.bf16.gmra.mxu3 %vm395_vm0, %v3007_v24  ;;  %v485_v12 = vrot.slane %v478_v4, 7  ;;  %v227_v22 = vld [vmem:[#allocation8 + $0x200] sm:$0xff]  ;;  %v3066_v43 = vld [vmem:[#allocation12 + $0x190] sm:$0xff]  ;;  %v180_v4 = vld [vmem:[#allocation8 + $0x88] sm:$0xff] }
  0x39   :  { %1645 = vmatpush.bf16.msrb.mxu3 %v3019_v20  ;;  %1703 = vmatpush.bf16.msrb.mxu0 %v3035_v21  ;;  %v3068_v20 = vld [vmem:[#allocation12 + $0x1a0] sm:$0xff] }
  0x3a   :  { %2489 = vmatmul.msk.bf16.gmra.mxu2 %vm395_vm0, %v3009_v25  ;;  %1674 = vmatpush.bf16.msrb.mxu1 %v3027_v57  ;;  %v487_v19 = vsel %vm486_vm1, %v485_v12, %v477_v11  ;;  %v243_v24 = vld [vmem:[#allocation8 + $0x280] sm:$0xff]  ;;  %v229_v25 = vld [vmem:[#allocation8 + $0x210] sm:$0xff]  ;;  %v246_v11 = vld [vmem:[#allocation8 + $0x298] sm:$0xff] }
  0x3b   :  { %1732 = vmatpush.bf16.msrb.mxu2 %v3043_v45  ;;  %v323_v34 = vpack.c.bf16 %v243_v24, %v227_v22  ;;  %v3048_v52 = vld [vmem:[#allocation12 + $0x100] sm:$0xff]  ;;  %v3063_v12 = vld [vmem:[#allocation12 + $0x178] sm:$0xff]  ;;  %v212_v22 = vld [vmem:[#allocation8 + $0x188] sm:$0xff] }
  0x3c   :  { %v3064_v54 = vld [vmem:[#allocation12 + $0x180] sm:$0xff] }
  0x3d   :  { %1646 = vmatpush.bf16.msrb.mxu3 %v3018_v26  ;;  %1704 = vmatpush.bf16.msrb.mxu0 %v3034_v27  ;;  %v455_v48 = vld [vmem:[#allocation1] sm:$0xf]  ;;  %v162_v27 = vld [vmem:[%s3856_s3 + $0x7] sm:$0x1]  ;;  %v259_v55 = vld [vmem:[#allocation8 + $0x300] sm:$0xff] }
  0x3e   :  { %458 = vst [vmem:[#allocation1] ss:$9 sm:$0xff] %v158_v44  ;;  %1675 = vmatpush.bf16.msrb.mxu1 %v3026_v1  ;;  %v479_v8 = vunpack.c.l.b16 %v455_v48  ;;  %v245_v26 = vld [vmem:[#allocation8 + $0x290] sm:$0xff]  ;;  %v3065_v48 = vld [vmem:[#allocation12 + $0x188] sm:$0xff]  ;;  %v275_v57 = vld [vmem:[#allocation8 + $0x380] sm:$0xff] }
  0x3f   :  { %1733 = vmatpush.bf16.msrb.mxu2 %v3042_v61  ;;  %v325_v35 = vpack.c.bf16 %v245_v26, %v229_v25  ;;  %v198_v61 = vld [vmem:[#allocation8 + $0x118] sm:$0xff]  ;;  %v199_v25 = vld [vmem:[#allocation8 + $0x120] sm:$0xff] }
  0x40   :  { %v488_v17 = vrot.slane %v479_v8, 6  ;;  %v3079_v1 = vld [vmem:[#allocation12 + $0x1f8] sm:$0xff]  ;;  %v169_v8 = vld [vmem:[#allocation8 + $0x30] sm:$0xff]  ;;  %v215_v26 = vld [vmem:[#allocation8 + $0x1a0] sm:$0xff] }
  0x41   :  { %1647 = vmatpush.bf16.msrb.mxu3 %v3017_v30  ;;  %1705 = vmatpush.bf16.msrb.mxu0 %v3033_v32  ;;  %v182_v30 = vld [vmem:[#allocation8 + $0x98] sm:$0xff] }
  0x42   :  { %1676 = vmatpush.bf16.msrb.mxu1 %v3025_v6  ;;  %v490_v28 = vsel %vm489_vm2, %v488_v17, %v487_v19  ;;  %v294_v39 = vpack.c.bf16 %v182_v30, %v166_v29  ;;  %v167_v6 = vld [vmem:[#allocation8 + $0x20] sm:$0xff]  ;;  %v3062_v17 = vld [vmem:[#allocation12 + $0x170] sm:$0xff]  ;;  %v3061_v19 = vld [vmem:[#allocation12 + $0x168] sm:$0xff] }
  0x43   :  { %1734 = vmatpush.bf16.msrb.mxu2 %v3041_v2  ;;  %v3075_v29 = vld [vmem:[#allocation12 + $0x1d8] sm:$0xff] }
  0x44   :  { %v262_v30 = vld [vmem:[#allocation8 + $0x318] sm:$0xff] }
  0x45   :  { %1648 = vmatpush.bf16.msrb.mxu3 %v3016_v36  ;;  %1706 = vmatpush.bf16.msrb.mxu0 %v3032_v37  ;;  %v459_v51 = vld [vmem:[#allocation1] sm:$0xf] }
  0x46   :  { %462 = vst [vmem:[#allocation1] ss:$9 sm:$0xff] %v159_v50  ;;  %v480_v15 = vunpack.c.l.b16 %v459_v51  ;;  %1677 = vmatpush.bf16.msrb.mxu1 %v3024_v16  ;;  %v3051_v36 = vld [vmem:[#allocation12 + $0x118] sm:$0xff] }
  0x47   :  { %1735 = vmatpush.bf16.msrb.mxu2 %v3040_v9  ;;  %v3067_v37 = vld [vmem:[#allocation12 + $0x198] sm:$0xff]  ;;  %v185_v9 = vld [vmem:[#allocation8 + $0xb0] sm:$0xff] }
  0x48   :  { %1649 = vmatmul.bf16.vlgmr.msrb.gmra.mxu3 %v291_v46  ;;  %1707 = vmatmul.bf16.vlgmr.msrb.gmra.mxu0 %v293_v47  ;;  %v491_v23 = vrot.slane %v480_v15, 5  ;;  %v3049_v46 = vld [vmem:[#allocation12 + $0x108] sm:$0xff]  ;;  %v3078_v15 = vld [vmem:[#allocation12 + $0x1f0] sm:$0xff] }
  0x49   :  { %1757 = vmatpush.bf16.msra.mxu3 %v3055_v62  ;;  %1815 = vmatpush.bf16.msra.mxu0 %v3071_v0  ;;  %v214_v62 = vld [vmem:[#allocation8 + $0x198] sm:$0xff] }
  0x4a   :  { %2490 = vmatmul.msk.bf16.gmra.mxu2 %vm395_vm0, %v3010_v49  ;;  %v493_v38 = vsel %vm492_vm3, %v491_v23, %v490_v28  ;;  %v310_v2 = vpack.c.bf16 %v214_v62, %v198_v61  ;;  %v3060_v23 = vld [vmem:[#allocation12 + $0x160] sm:$0xff]  ;;  %v217_v28 = vld [vmem:[#allocation8 + $0x1b0] sm:$0xff]  ;;  %v3083_v61 = vld [vmem:[#allocation12 + $0x218] sm:$0xff] }
  0x4b   :  { %1844 = vmatpush.bf16.msra.mxu2 %v3079_v1  ;;  %v3099_v62 = vld [vmem:[#allocation12 + $0x298] sm:$0xff]  ;;  %v3082_v1 = vld [vmem:[#allocation12 + $0x210] sm:$0xff] }
  0x4d   :  { %v463_v60 = vld [vmem:[#allocation1] sm:$0xf]  ;;  %1758 = vmatpush.bf16.msra.mxu3 %v3054_v3  ;;  %1816 = vmatpush.bf16.msra.mxu0 %v3070_v5  ;;  %v164_v3 = vld [vmem:[#allocation8 + $0x8] sm:$0xff] }
  0x4e   :  { %466 = vst [vmem:[#allocation1] ss:$9 sm:$0xff] %v160_v56  ;;  %v481_v21 = vunpack.c.l.b16 %v463_v60  ;;  %v292_v5 = vpack.c.bf16 %v180_v4, %v164_v3 }
  0x4f   :  { %1845 = vmatpush.bf16.msra.mxu2 %v3078_v15  ;;  %v265_v15 = vld [vmem:[#allocation8 + $0x330] sm:$0xff] }
  0x50   :  { %v494_v33 = vrot.slane %v481_v21, 4  ;;  %v196_v21 = vld [vmem:[#allocation8 + $0x108] sm:$0xff] }
  0x51   :  { %1759 = vmatpush.bf16.msra.mxu3 %v3053_v10  ;;  %1817 = vmatpush.bf16.msra.mxu0 %v3069_v13  ;;  %v230_v10 = vld [vmem:[#allocation8 + $0x218] sm:$0xff]  ;;  %v308_v24 = vpack.c.bf16 %v212_v22, %v196_v21 }
  0x52   :  { %v496_v44 = vsel %vm495_vm4, %v494_v33, %v493_v38  ;;  %v326_v16 = vpack.c.bf16 %v246_v11, %v230_v10  ;;  %v311_v33 = vpack.c.bf16 %v215_v26, %v199_v25  ;;  %v3074_v38 = vld [vmem:[#allocation12 + $0x1d0] sm:$0xff]  ;;  %v263_v11 = vld [vmem:[#allocation8 + $0x320] sm:$0xff] }
  0x53   :  { %v3573_v25 = vld [vmem:[%s3858_s5] ss:$0 sm:$0xff] }
  0x55   :  { %v467_v14 = vld [vmem:[#allocation1] sm:$0xf]  ;;  %1760 = vmatpush.bf16.msra.mxu3 %v3052_v18  ;;  %1818 = vmatpush.bf16.msra.mxu0 %v3068_v20  ;;  %v3077_v18 = vld [vmem:[#allocation12 + $0x1e8] sm:$0xff]  ;;  %v3076_v20 = vld [vmem:[#allocation12 + $0x1e0] sm:$0xff] }
  0x56   :  { %470 = vst [vmem:[#allocation1] ss:$9 sm:$0xff] %v161_v7  ;;  %v482_v31 = vunpack.c.l.b16 %v467_v14  ;;  %v183_v7 = vld [vmem:[#allocation8 + $0xa0] sm:$0xff]  ;;  %v297_v14 = vpack.c.bf16 %v185_v9, %v169_v8  ;;  %1846 = vmatpush.bf16.msra.mxu2 %v3077_v18  ;;  %v276_v8 = vld [vmem:[#allocation8 + $0x388] sm:$0xff]  ;;  %v218_v18 = vld [vmem:[#allocation8 + $0x1b8] sm:$0xff] }
  0x57   :  { %v295_v13 = vpack.c.bf16 %v183_v7, %v167_v6  ;;  %v3097_v6 = vld [vmem:[#allocation12 + $0x288] sm:$0xff] }
  0x58   :  { %1654 = vmatmul.bf16.gmra.mxu3 %v307_v58  ;;  %1712 = vmatmul.bf16.gmra.mxu0 %v309_v59  ;;  %v497_v42 = vrot.slane %v482_v31, 3  ;;  %v261_v58 = vld [vmem:[#allocation8 + $0x310] sm:$0xff]  ;;  %v278_v31 = vld [vmem:[#allocation8 + $0x398] sm:$0xff]  ;;  %v260_v7 = vld [vmem:[#allocation8 + $0x308] sm:$0xff] }
  0x59   :  { %1761 = vmatpush.bf16.msra.mxu3 %v3051_v36  ;;  %1819 = vmatpush.bf16.msra.mxu0 %v3067_v37  ;;  %v277_v59 = vld [vmem:[#allocation8 + $0x390] sm:$0xff]  ;;  %v3103_v36 = vld [vmem:[#allocation12 + $0x2b8] sm:$0xff]  ;;  %v342_v37 = vpack.c.bf16 %v278_v31, %v262_v30  ;;  %v340_v10 = vpack.c.bf16 %v276_v8, %v260_v7  ;;  %v184_v30 = vld [vmem:[#allocation8 + $0xa8] sm:$0xff] }
  0x5a   :  { %2491 = vmatmul.msk.bf16.gmra.mxu2 %vm395_vm0, %v3011_v63  ;;  %v499_v47 = vsel %vm498_vm5, %v497_v42, %v496_v44  ;;  %v339_v63 = vpack.c.bf16 %v275_v57, %v259_v55  ;;  %v341_v0 = vpack.c.bf16 %v277_v59, %v261_v58  ;;  %v3073_v42 = vld [vmem:[#allocation12 + $0x1c8] sm:$0xff]  ;;  %v233_v55 = vld [vmem:[#allocation8 + $0x230] sm:$0xff]  ;;  %v170_v57 = vld [vmem:[#allocation8 + $0x38] sm:$0xff] }
  0x5b   :  { %1847 = vmatpush.bf16.msra.mxu2 %v3076_v20  ;;  %v3085_v44 = vld [vmem:[#allocation12 + $0x228] sm:$0xff]  ;;  %v186_v58 = vld [vmem:[#allocation8 + $0xb8] sm:$0xff] }
  0x5c   :  { %v200_v8 = vld [vmem:[#allocation8 + $0x128] sm:$0xff] }
  0x5d   :  { %v471_v32 = vld [vmem:[#allocation1] sm:$0xf]  ;;  %1762 = vmatpush.bf16.msra.mxu3 %v3050_v41  ;;  %1820 = vmatpush.bf16.msra.mxu0 %v3066_v43  ;;  %v3057_v43 = vld [vmem:[#allocation12 + $0x148] sm:$0xff] }
  0x5e   :  { %474 = vst [vmem:[#allocation1] ss:$9 sm:$0xff] %v162_v27  ;;  %v483_v40 = vunpack.c.l.b16 %v471_v32  ;;  %v201_v27 = vld [vmem:[#allocation8 + $0x130] sm:$0xff]  ;;  %v3059_v32 = vld [vmem:[#allocation12 + $0x158] sm:$0xff] }
  0x5f   :  { %1848 = vmatpush.bf16.msra.mxu2 %v3075_v29  ;;  %v3102_v41 = vld [vmem:[#allocation12 + $0x2b0] sm:$0xff]  ;;  %v168_v29 = vld [vmem:[#allocation8 + $0x28] sm:$0xff] }
  0x60   :  { %v500_v45 = vrot.slane %v483_v40, 2  ;;  %v3086_v40 = vld [vmem:[#allocation12 + $0x230] sm:$0xff] }
  0x61   :  { %1763 = vmatpush.bf16.msra.mxu3 %v3049_v46  ;;  %1821 = vmatpush.bf16.msra.mxu0 %v3065_v48  ;;  %v228_v46 = vld [vmem:[#allocation8 + $0x208] sm:$0xff]  ;;  %v3072_v48 = vld [vmem:[#allocation12 + $0x1c0] sm:$0xff] }
  0x62   :  { %v502_v51 = vsel %vm501_vm6, %v500_v45, %v499_v47  ;;  %v3101_v45 = vld [vmem:[#allocation12 + $0x2a8] sm:$0xff] }
  0x63   :  { %1849 = vmatpush.bf16.msra.mxu2 %v3074_v38  ;;  %v244_v47 = vld [vmem:[#allocation8 + $0x288] sm:$0xff] }
  0x65   :  { %v475_v49 = vld [vmem:[#allocation1] sm:$0xf]  ;;  %1764 = vmatpush.bf16.msra.mxu3 %v3048_v52  ;;  %1822 = vmatpush.bf16.msra.mxu0 %v3064_v54  ;;  %v3084_v52 = vld [vmem:[#allocation12 + $0x220] sm:$0xff] }
  0x66   :  { %v484_v50 = vunpack.c.l.b16 %v475_v49  ;;  %v3056_v49 = vld [vmem:[#allocation12 + $0x140] sm:$0xff] }
  0x67   :  { %1850 = vmatpush.bf16.msra.mxu2 %v3073_v42  ;;  %v247_v54 = vld [vmem:[#allocation8 + $0x2a0] sm:$0xff]  ;;  %v234_v42 = vld [vmem:[#allocation8 + $0x238] sm:$0xff] }
  0x68   :  { %1659 = vmatmul.bf16.gmra.mxu3 %v323_v34  ;;  %1717 = vmatmul.bf16.gmra.mxu0 %v325_v35  ;;  %v503_v53 = vrot.slane %v484_v50, 1  ;;  %v313_v34 = vpack.c.bf16 %v217_v28, %v201_v27  ;;  %v3087_v35 = vld [vmem:[#allocation12 + $0x238] sm:$0xff]  ;;  %v324_v50 = vpack.c.bf16 %v244_v47, %v228_v46 }
  0x69   :  { %1873 = vmatpush.bf16.msrb.mxu3 %v3087_v35  ;;  %1931 = vmatpush.bf16.msrb.mxu0 %v3103_v36  ;;  %v3119_v28 = vld [vmem:[#allocation12 + $0x338] sm:$0xff]  ;;  %v171_v35 = vld [vmem:[#allocation8 + $0x40] sm:$0xff] }
  0x6a   :  { %1736 = vmatmul.bf16.vlgmr.msrb.gmra.mxu2 %v294_v39  ;;  %v505_v56 = vsel %vm504_vm7, %v503_v53, %v502_v51  ;;  %v3058_v39 = vld [vmem:[#allocation12 + $0x150] sm:$0xff]  ;;  %v231_v51 = vld [vmem:[#allocation8 + $0x220] sm:$0xff]  ;;  %v3095_v46 = vld [vmem:[#allocation12 + $0x278] sm:$0xff] }
  0x6b   :  { %v506_v60 = vpack.c.b16 %v505_v56, %v505_v56  ;;  %1851 = vmatpush.bf16.msra.mxu2 %v3072_v48  ;;  %v3100_v53 = vld [vmem:[#allocation12 + $0x2a0] sm:$0xff]  ;;  %v249_v56 = vld [vmem:[#allocation8 + $0x2b0] sm:$0xff]  ;;  %v327_v59 = vpack.c.bf16 %v247_v54, %v231_v51  ;;  %v3117_v51 = vld [vmem:[#allocation12 + $0x328] sm:$0xff] }
  0x6c   :  { %v187_v36 = vld [vmem:[#allocation8 + $0xc0] sm:$0xff] }
  0x6d   :  { %2463 = vmatmul.msk.bf16.vlgmr.msra.gmra.mxu1 %vm395_vm0, %v506_v60  ;;  %1874 = vmatpush.bf16.msrb.mxu3 %v3086_v40  ;;  %v329_v60 = vpack.c.bf16 %v249_v56, %v233_v55  ;;  %v189_v40 = vld [vmem:[#allocation8 + $0xd0] sm:$0xff]  ;;  %v3419_v56 = vmov 8.0  }
  0x6e   :  { %1786 = vmatpush.bf16.msra.mxu1 %v3063_v12  ;;  %1932 = vmatpush.bf16.msrb.mxu0 %v3102_v41  ;;  %v3080_v12 = vld [vmem:[#allocation12 + $0x200] sm:$0xff]  ;;  %v3111_v41 = vld [vmem:[#allocation12 + $0x2f8] sm:$0xff]  ;;  %v3110_v55 = vld [vmem:[#allocation12 + $0x2f0] sm:$0xff] }
  0x6f   :  { %1960 = vmatpush.bf16.msrb.mxu2 %v3111_v41 }
  0x71   :  { %1875 = vmatpush.bf16.msrb.mxu3 %v3085_v44 }
  0x72   :  { %1787 = vmatpush.bf16.msra.mxu1 %v3062_v17  ;;  %1933 = vmatpush.bf16.msrb.mxu0 %v3101_v45  ;;  %v202_v17 = vld [vmem:[#allocation8 + $0x138] sm:$0xff] }
  0x73   :  { %1961 = vmatpush.bf16.msrb.mxu2 %v3110_v55 }
  0x75   :  { %1876 = vmatpush.bf16.msrb.mxu3 %v3084_v52 }
  0x76   :  { %1788 = vmatpush.bf16.msra.mxu1 %v3061_v19  ;;  %1934 = vmatpush.bf16.msrb.mxu0 %v3100_v53 }
  0x78   :  { %1664 = vmatmul.bf16.gmra.mxu3 %v339_v63  ;;  %1722 = vmatmul.bf16.gmra.mxu0 %v341_v0  ;;  %v298_v0 = vpack.c.bf16 %v186_v58, %v170_v57  ;;  %v3094_v58 = vld [vmem:[#allocation12 + $0x270] sm:$0xff] }
  0x79   :  { %1877 = vmatpush.bf16.msrb.mxu3 %v3083_v61  ;;  %v3116_v61 = vld [vmem:[#allocation12 + $0x320] sm:$0xff] }
  0x7a   :  { %1741 = vmatmul.bf16.gmra.mxu2 %v310_v2  ;;  %1789 = vmatpush.bf16.msra.mxu1 %v3060_v23  ;;  %v3098_v2 = vld [vmem:[#allocation12 + $0x290] sm:$0xff] }
  0x7b   :  { %1935 = vmatpush.bf16.msrb.mxu0 %v3099_v62  ;;  %v3109_v62 = vld [vmem:[#allocation12 + $0x2e8] sm:$0xff] }
  0x7c   :  { %1962 = vmatpush.bf16.msrb.mxu2 %v3109_v62 }
  0x7d   :  { %1678 = vmatmul.bf16.vlgmr.msrb.gmra.mxu1 %v292_v5  ;;  %1878 = vmatpush.bf16.msrb.mxu3 %v3082_v1  ;;  %v3081_v5 = vld [vmem:[#allocation12 + $0x208] sm:$0xff] }
  0x7e   :  { %1790 = vmatpush.bf16.msra.mxu1 %v3059_v32 }
  0x7f   :  { %1936 = vmatpush.bf16.msrb.mxu0 %v3098_v2 }
  0x81   :  { %1879 = vmatpush.bf16.msrb.mxu3 %v3081_v5 }
  0x82   :  { %1791 = vmatpush.bf16.msra.mxu1 %v3058_v39  ;;  %v173_v39 = vld [vmem:[#allocation8 + $0x50] sm:$0xff] }
  0x83   :  { %1937 = vmatpush.bf16.msrb.mxu0 %v3097_v6  ;;  %v3115_v6 = vld [vmem:[#allocation12 + $0x318] sm:$0xff] }
  0x85   :  { %1880 = vmatpush.bf16.msrb.mxu3 %v3080_v12 }
  0x86   :  { %1792 = vmatpush.bf16.msra.mxu1 %v3057_v43  ;;  %v250_v43 = vld [vmem:[#allocation8 + $0x2b8] sm:$0xff] }
  0x87   :  { %v330_v54 = vpack.c.bf16 %v250_v43, %v234_v42  ;;  %v3091_v42 = vld [vmem:[#allocation12 + $0x258] sm:$0xff] }
  0x88   :  { %1765 = vmatmul.bf16.vlgmr.msra.gmra.mxu3 %v295_v13  ;;  %1823 = vmatmul.bf16.vlgmr.msra.gmra.mxu0 %v297_v14  ;;  %v3096_v13 = vld [vmem:[#allocation12 + $0x280] sm:$0xff] }
  0x89   :  { %v279_v14 = vld [vmem:[#allocation8 + $0x3a0] sm:$0xff]  ;;  %1938 = vmatpush.bf16.msrb.mxu0 %v3096_v13  ;;  %1989 = vmatpush.bf16.msra.mxu3 %v3119_v28 }
  0x8a   :  { %1746 = vmatmul.bf16.gmra.mxu2 %v326_v16  ;;  %1793 = vmatpush.bf16.msra.mxu1 %v3056_v49  ;;  %v281_v16 = vld [vmem:[#allocation8 + $0x3b0] sm:$0xff]  ;;  %v343_v21 = vpack.c.bf16 %v279_v14, %v263_v11  ;;  %v299_v49 = vpack.c.bf16 %v187_v36, %v171_v35  ;;  %v3108_v11 = vld [vmem:[#allocation12 + $0x2e0] sm:$0xff]  ;;  %v266_v36 = vld [vmem:[#allocation8 + $0x338] sm:$0xff] }
  0x8b   :  { %v345_v22 = vpack.c.bf16 %v281_v16, %v265_v15  ;;  %1963 = vmatpush.bf16.msrb.mxu2 %v3108_v11 }
  0x8d   :  { %1683 = vmatmul.bf16.gmra.mxu1 %v308_v24  ;;  %v314_v24 = vpack.c.bf16 %v218_v18, %v202_v17  ;;  %v3092_v17 = vld [vmem:[#allocation12 + $0x260] sm:$0xff] }
  0x8e   :  { %1902 = vmatpush.bf16.msrb.mxu1 %v3095_v46 }
  0x92   :  { %1903 = vmatpush.bf16.msrb.mxu1 %v3094_v58 }
  0x98   :  { %1770 = vmatmul.bf16.gmra.mxu3 %v311_v33  ;;  %1828 = vmatmul.bf16.gmra.mxu0 %v313_v34  ;;  %v3583_v33 = vld [vmem:[%s3860_s7] ss:$0 sm:$0xff]  ;;  %v296_v34 = vpack.c.bf16 %v184_v30, %v168_v29 }
  0x99   :  { %v205_v29 = vld [vmem:[#allocation8 + $0x150] sm:$0xff] }
  0x9a   :  { %1751 = vmatmul.bf16.gmra.mxu2 %v342_v37  ;;  %v3118_v37 = vld [vmem:[#allocation12 + $0x330] sm:$0xff] }
  0x9b   :  { %1990 = vmatpush.bf16.msra.mxu3 %v3118_v37  ;;  %v221_v30 = vld [vmem:[#allocation8 + $0x1d0] sm:$0xff]  ;;  %v282_v37 = vld [vmem:[#allocation8 + $0x3b8] sm:$0xff] }
  0x9d   :  { %1688 = vmatmul.bf16.gmra.mxu1 %v324_v50  ;;  %v301_v50 = vpack.c.bf16 %v189_v40, %v173_v39 }
  0x9f   :  { %1991 = vmatpush.bf16.msra.mxu3 %v3117_v51  ;;  %v3135_v51 = vld [vmem:[#allocation12 + $0x3b8] sm:$0xff] }
  0xa0   :  { %2047 = vmatpush.bf16.msra.mxu0 %v3135_v51  ;;  %v3132_v51 = vld [vmem:[#allocation12 + $0x3a0] sm:$0xff] }
  0xa3   :  { %1992 = vmatpush.bf16.msra.mxu3 %v3116_v61 }
  0xa5   :  { %v417_v63 = vpop.f32.mrf.mxu0 }
  0xa6   :  { %v418_v32 = vadd.f32 %v3573_v25, %v417_v63 }
  0xa7   :  { %1993 = vmatpush.bf16.msra.mxu3 %v3115_v6 }
  0xa8   :  { %1775 = vmatmul.bf16.gmra.mxu3 %v327_v59  ;;  %1833 = vmatmul.bf16.gmra.mxu0 %v329_v60  ;;  %3171 = vtanh.f32 %v418_v32 }
  0xaa   :  { %1852 = vmatmul.bf16.vlgmr.msra.gmra.mxu2 %v298_v0 }
  0xab   :  { %v427_v3 = vpop.f32.mrf.mxu3 }
  0xac   :  { %v428_v44 = vadd.f32 %v3573_v25, %v427_v3  ;;  %v3093_v3 = vld [vmem:[#allocation12 + $0x268] sm:$0xff] }
  0xad   :  { %v585_v4 = vpop.f32.mrf.mxu2  ;;  %v419_v9 = vpop.f32.mrf.mxu0  ;;  %1693 = vmatmul.bf16.gmra.mxu1 %v340_v10 }
  0xae   :  { %v420_v38 = vadd.f32 %v3573_v25, %v419_v9  ;;  %v586_v47 = vadd.f32 %v3583_v33, %v585_v4  ;;  %v3172_v59 = vpop.eup %3171  ;;  %v216_v9 = vld [vmem:[#allocation8 + $0x1a8] sm:$0xff]  ;;  %1904 = vmatpush.bf16.msrb.mxu1 %v3093_v3  ;;  %v3134_v3 = vld [vmem:[#allocation12 + $0x3b0] sm:$0xff] }
  0xaf   :  { %v2113_v1 = vrot.slane %v3172_v59, 4  ;;  %2048 = vmatpush.bf16.msra.mxu0 %v3134_v3  ;;  %v174_v3 = vld [vmem:[#allocation8 + $0x58] sm:$0xff] }
  0xb0   :  { %3173 = vtanh.f32 %v420_v38 }
  0xb1   :  { %3175 = vrcp.f32 %v3419_v56  ;;  %v2114_v16 = vadd.f32 %v3172_v59, %v2113_v1  ;;  %v346_v56 = vpack.c.bf16 %v282_v37, %v266_v36  ;;  %v3112_v1 = vld [vmem:[#allocation12 + $0x300] sm:$0xff] }
  0xb2   :  { %3177 = vtanh.f32 %v428_v44  ;;  %1905 = vmatpush.bf16.msrb.mxu1 %v3092_v17 }
  0xb3   :  { %v3568_v19 = vpop.f32.mrf.mxu3  ;;  %3179 = vtanh.f32 %v586_v47 }
  0xb4   :  { %v430_v63 = vadd.f32 %v3573_v25, %v3568_v19 }
  0xb5   :  { %v587_v20 = vpop.f32.mrf.mxu2  ;;  %v422_v23 = vpop.f32.mrf.mxu0 }
  0xb6   :  { %v423_v52 = vadd.f32 %v3573_v25, %v422_v23  ;;  %v588_v57 = vadd.f32 %v3583_v33, %v587_v20  ;;  %v3174_v0 = vpop.eup %3173  ;;  %v312_v20 = vpack.c.bf16 %v216_v9, %v200_v8  ;;  %v3114_v23 = vld [vmem:[#allocation12 + $0x310] sm:$0xff]  ;;  %1906 = vmatpush.bf16.msrb.mxu1 %v3091_v42  ;;  %v3105_v8 = vld [vmem:[#allocation12 + $0x2c8] sm:$0xff] }
  0xb7   :  { %v3599_v4 = vpop.eup %3175  ;;  %v2119_v13 = vrot.slane %v3174_v0, 4  ;;  %1994 = vmatpush.bf16.msra.mxu3 %v3114_v23  ;;  %v3133_v23 = vld [vmem:[#allocation12 + $0x3a8] sm:$0xff] }
  0xb8   :  { %1780 = vmatmul.bf16.gmra.mxu3 %v343_v21  ;;  %1838 = vmatmul.bf16.gmra.mxu0 %v345_v22  ;;  %3181 = vtanh.f32 %v423_v52  ;;  %v3601_v7 = vpop.eup %3177  ;;  %v203_v21 = vld [vmem:[#allocation8 + $0x140] sm:$0xff]  ;;  %v2210_v39 = vmul.f32 8.0, %v3599_v4  ;;  %vm2214_vm8 = vweird.f32 %v3599_v4 }
  0xb9   :  { %3183 = vtanh.f32 %v588_v57  ;;  %v3180_v12 = vpop.eup %3179  ;;  %v219_v22 = vld [vmem:[#allocation8 + $0x1c0] sm:$0xff]  ;;  %v2120_v32 = vadd.f32 %v3174_v0, %v2119_v13  ;;  %v2137_v38 = vrot.slane %v3601_v7, 4  ;;  %2049 = vmatpush.bf16.msra.mxu0 %v3133_v23 }
  0xba   :  { %1857 = vmatmul.bf16.gmra.mxu2 %v314_v24  ;;  %v2161_v24 = vrot.slane %v3180_v12, 4  ;;  %v315_v47 = vpack.c.bf16 %v219_v22, %v203_v21 }
  0xbb   :  { %v3575_v26 = vpop.f32.mrf.mxu3  ;;  %v2121_v58 = vrot.slane %v2120_v32, 2 }
  0xbc   :  { %v433_v19 = vadd.f32 %v3573_v25, %v3575_v26  ;;  %v2115_v26 = vrot.slane %v2114_v16, 2  ;;  %v2162_v57 = vadd.f32 %v3180_v12, %v2161_v24 }
  0xbd   :  { %v3577_v27 = vpop.f32.mrf.mxu2  ;;  %v424_v31 = vpop.f32.mrf.mxu0  ;;  %1794 = vmatmul.bf16.vlgmr.msra.gmra.mxu1 %v296_v34  ;;  %v2122_v12 = vadd.f32 %v2121_v58, %v2120_v32  ;;  %v251_v58 = vld [vmem:[#allocation8 + $0x2c0] sm:$0xff]  ;;  %2050 = vmatpush.bf16.msra.mxu0 %v3132_v51 }
  0xbe   :  { %v425_v60 = vadd.f32 %v3573_v25, %v424_v31  ;;  %v591_v14 = vadd.f32 %v3583_v33, %v3577_v27  ;;  %v3182_v15 = vpop.eup %3181  ;;  %v3107_v27 = vld [vmem:[#allocation12 + $0x2d8] sm:$0xff]  ;;  %v2116_v62 = vadd.f32 %v2115_v26, %v2114_v16  ;;  %v2163_v11 = vrot.slane %v2162_v57, 2 }
  0xbf   :  { %v3184_v18 = vpop.eup %3183  ;;  %v2125_v34 = vrot.slane %v3182_v15, 4  ;;  %1964 = vmatpush.bf16.msrb.mxu2 %v3107_v27  ;;  %v232_v27 = vld [vmem:[#allocation8 + $0x228] sm:$0xff]  ;;  %v2123_v37 = vrot.slane %v2122_v12, 1 }
  0xc0   :  { %3185 = vtanh.f32 %v425_v60  ;;  %v2167_v40 = vrot.slane %v3184_v18, 4  ;;  %v3090_v60 = vld [vmem:[#allocation12 + $0x250] sm:$0xff]  ;;  %v2164_v36 = vadd.f32 %v2163_v11, %v2162_v57 }
  0xc1   :  { %3187 = vtanh.f32 %v430_v63  ;;  %v2126_v59 = vadd.f32 %v3182_v15, %v2125_v34  ;;  %v2211_v63 = vsub.f32 1.0, %v2210_v39  ;;  %1907 = vmatpush.bf16.msrb.mxu1 %v3090_v60 }
  0xc2   :  { %3189 = vtanh.f32 %v591_v14  ;;  %v2168_v0 = vadd.f32 %v3184_v18, %v2167_v40  ;;  %v3089_v18 = vld [vmem:[#allocation12 + $0x248] sm:$0xff]  ;;  %v2165_v60 = vrot.slane %v2164_v36, 1 }
  0xc3   :  { %v3587_v45 = vpop.f32.mrf.mxu3  ;;  %3191 = vtanh.f32 %v433_v19  ;;  %v2127_v13 = vrot.slane %v2126_v59, 2 }
  0xc4   :  { %v435_v44 = vadd.f32 %v3573_v25, %v3587_v45  ;;  %v2169_v21 = vrot.slane %v2168_v0, 2 }
  0xc5   :  { %v592_v48 = vpop.f32.mrf.mxu2  ;;  %v3591_v53 = vpop.f32.mrf.mxu0  ;;  %1908 = vmatpush.bf16.msrb.mxu1 %v3089_v18  ;;  %v2128_v26 = vadd.f32 %v2127_v13, %v2126_v59  ;;  %v237_v59 = vld [vmem:[#allocation8 + $0x250] sm:$0xff] }
  0xc6   :  { %v593_v28 = vadd.f32 %v3583_v33, %v592_v48  ;;  %v3186_v31 = vpop.eup %3185  ;;  %v317_v48 = vpack.c.bf16 %v221_v30, %v205_v29 }
  0xc7   :  { %v3188_v43 = vpop.eup %3187  ;;  %v2131_v52 = vrot.slane %v3186_v31, 4 }
  0xc8   :  { %1881 = vmatmul.bf16.vlgmr.msrb.gmra.mxu3 %v299_v49  ;;  %1939 = vmatmul.bf16.vlgmr.msrb.gmra.mxu0 %v301_v50  ;;  %v3113_v49 = vld [vmem:[#allocation12 + $0x308] sm:$0xff]  ;;  %v3106_v50 = vld [vmem:[#allocation12 + $0x2d0] sm:$0xff]  ;;  %3193 = vtanh.f32 %v593_v28  ;;  %v2143_v45 = vrot.slane %v3188_v43, 4  ;;  %v3190_v61 = vpop.eup %3189 }
  0xc9   :  { %1995 = vmatpush.bf16.msra.mxu3 %v3113_v49  ;;  %1965 = vmatpush.bf16.msrb.mxu2 %v3106_v50  ;;  %v2132_v6 = vadd.f32 %v3186_v31, %v2131_v52  ;;  %v3192_v9 = vpop.eup %3191  ;;  %v2173_v16 = vrot.slane %v3190_v61, 4  ;;  %v248_v31 = vld [vmem:[#allocation8 + $0x2a8] sm:$0xff]  ;;  %v235_v50 = vld [vmem:[#allocation8 + $0x240] sm:$0xff] }
  0xca   :  { %1862 = vmatmul.bf16.gmra.mxu2 %v330_v54  ;;  %v2144_v15 = vadd.f32 %v3188_v43, %v2143_v45  ;;  %v2149_v29 = vrot.slane %v3192_v9, 4  ;;  %v328_v49 = vpack.c.bf16 %v248_v31, %v232_v27  ;;  %v253_v45 = vld [vmem:[#allocation8 + $0x2d0] sm:$0xff]  ;;  %v331_v18 = vpack.c.bf16 %v251_v58, %v235_v50 }
  0xcb   :  { %v3597_v2 = vpop.f32.mrf.mxu3  ;;  %v2133_v30 = vrot.slane %v2132_v6, 2  ;;  %v2174_v42 = vadd.f32 %v3190_v61, %v2173_v16  ;;  %v2129_v61 = vrot.slane %v2128_v26, 1 }
  0xcc   :  { %v2145_v40 = vrot.slane %v2144_v15, 2 }
  0xcd   :  { %v595_v5 = vpop.f32.mrf.mxu2  ;;  %v3603_v10 = vpop.f32.mrf.mxu0  ;;  %1799 = vmatmul.bf16.gmra.mxu1 %v312_v20  ;;  %1996 = vmatpush.bf16.msra.mxu3 %v3112_v1  ;;  %v2212_v20 = vmul.f32 %v3599_v4, %v2211_v63  ;;  %v2134_v57 = vadd.f32 %v2133_v30, %v2132_v6  ;;  %v2175_v13 = vrot.slane %v2174_v42, 2 }
  0xce   :  { %v596_v35 = vadd.f32 %v3583_v33, %v595_v5  ;;  %v2138_v5 = vadd.f32 %v3601_v7, %v2137_v38  ;;  %v3194_v14 = vpop.eup %3193  ;;  %1966 = vmatpush.bf16.msrb.mxu2 %v3105_v8  ;;  %v2117_v7 = vrot.slane %v2116_v62, 1  ;;  %v190_v8 = vld [vmem:[#allocation8 + $0xd8] sm:$0xff]  ;;  %v3629_v11 = vadd.f32 %v2145_v40, %v2144_v15 }
  0xcf   :  { %v2179_v38 = vrot.slane %v3194_v14, 4  ;;  %v2130_v15 = vadd.f32 %v2129_v61, %v2128_v26  ;;  %v2176_v27 = vadd.f32 %v2175_v13, %v2174_v42  ;;  %v280_v61 = vld [vmem:[#allocation8 + $0x3a8] sm:$0xff] }
  0xd0   :  { %3195 = vtanh.f32 %v596_v35  ;;  %v2139_v28 = vrot.slane %v2138_v5, 2  ;;  %v3104_v35 = vld [vmem:[#allocation12 + $0x2c0] sm:$0xff]  ;;  %v2118_v52 = vadd.f32 %v2117_v7, %v2116_v62  ;;  %v333_v7 = vpack.c.bf16 %v253_v45, %v237_v59 }
  0xd1   :  { %v2180_v1 = vadd.f32 %v3194_v14, %v2179_v38  ;;  %v2135_v14 = vrot.slane %v2134_v57, 1 }
  0xd2   :  { %1967 = vmatpush.bf16.msrb.mxu2 %v3104_v35  ;;  %v2166_v35 = vadd.f32 %v2165_v60, %v2164_v36  ;;  %v2177_v36 = vrot.slane %v2176_v27, 1  ;;  %v264_v60 = vld [vmem:[#allocation8 + $0x328] sm:$0xff] }
  0xd3   :  { %v3613_v41 = vpop.f32.mrf.mxu3  ;;  %v2136_v40 = vadd.f32 %v2135_v14, %v2134_v57 }
  0xd4   :  { %v2178_v13 = vadd.f32 %v2177_v36, %v2176_v27 }
  0xd5   :  { %v597_v46 = vpop.f32.mrf.mxu2  ;;  %v3618_v55 = vpop.f32.mrf.mxu0 }
  0xd6   :  { %v598_v54 = vadd.f32 %v3583_v33, %v597_v46  ;;  %v3196_v19 = vpop.eup %3195  ;;  %v2213_v46 = vadd.f32 %v3599_v4, %v2212_v20  ;;  %v3131_v20 = vld [vmem:[#allocation12 + $0x398] sm:$0xff] }
  0xd7   :  { %v2185_v43 = vrot.slane %v3196_v19, 4  ;;  %2051 = vmatpush.bf16.msra.mxu0 %v3131_v20  ;;  %v267_v20 = vld [vmem:[#allocation8 + $0x340] sm:$0xff] }
  0xd8   :  { %3197 = vtanh.f32 %v598_v54  ;;  %1886 = vmatmul.bf16.gmra.mxu3 %v315_v47  ;;  %1944 = vmatmul.bf16.gmra.mxu0 %v317_v48  ;;  %v2170_v47 = vadd.f32 %v2169_v21, %v2168_v0  ;;  %v2140_v54 = vadd.f32 %v2139_v28, %v2138_v5  ;;  %v2124_v0 = vadd.f32 %v2123_v37, %v2122_v12 }
  0xd9   :  { %3199 = vtanh.f32 %v435_v44  ;;  %v3088_v44 = vld [vmem:[#allocation12 + $0x240] sm:$0xff]  ;;  %v2186_v16 = vadd.f32 %v3196_v19, %v2185_v43  ;;  %v302_v12 = vpack.c.bf16 %v190_v8, %v174_v3  ;;  %v2181_v19 = vrot.slane %v2180_v1, 2 }
  0xda   :  { %1867 = vmatmul.bf16.gmra.mxu2 %v346_v56  ;;  %v2150_v56 = vadd.f32 %v3192_v9, %v2149_v29  ;;  %1909 = vmatpush.bf16.msrb.mxu1 %v3088_v44  ;;  %v2171_v5 = vrot.slane %v2170_v47, 1  ;;  %v2280_v31 = vsel %vm486_vm1, %v2124_v0, %v2118_v52  ;;  %v3640_v26 = vsel %vm2214_vm8, %v3599_v4, %v2213_v46 }
  0xdb   :  { %v3621_v17 = vpop.f32.mrf.mxu3  ;;  %v2182_v42 = vadd.f32 %v2181_v19, %v2180_v1  ;;  %v2147_v52 = vrot.slane %v3629_v11, 1  ;;  %v2216_v4 = vmul.f32 %v3640_v26, %v2166_v35  ;;  %v285_v19 = vld [vmem:[#allocation8 + $0x3d0] sm:$0xff]  ;;  %v2218_v35 = vmul.f32 %v3640_v26, %v2178_v13 }
  0xdd   :  { %v600_v22 = vpop.f32.mrf.mxu2  ;;  %v3625_v34 = vpop.f32.mrf.mxu0  ;;  %1804 = vmatmul.bf16.gmra.mxu1 %v328_v49  ;;  %v2281_v49 = vsel %vm489_vm2, %v2130_v15, %v2280_v31  ;;  %v2183_v8 = vrot.slane %v2182_v42, 1  ;;  %v269_v15 = vld [vmem:[#allocation8 + $0x350] sm:$0xff]  ;;  %v206_v31 = vld [vmem:[#allocation8 + $0x158] sm:$0xff] }
  0xde   :  { %v3198_v24 = vpop.eup %3197  ;;  %v601_v32 = vadd.f32 %v3583_v33, %v600_v22  ;;  %v2151_v22 = vrot.slane %v2150_v56, 2  ;;  %v2282_v3 = vsel %vm492_vm3, %v2136_v40, %v2281_v49 }
  0xdf   :  { %v3200_v39 = vpop.eup %3199  ;;  %v2191_v48 = vrot.slane %v3198_v24, 4 }
  0xe0   :  { %3201 = vtanh.f32 %v601_v32  ;;  %v2155_v63 = vrot.slane %v3200_v39, 4  ;;  %v2141_v32 = vrot.slane %v2140_v54, 1  ;;  %v2152_v43 = vadd.f32 %v2151_v22, %v2150_v56  ;;  %v3129_v56 = vld [vmem:[#allocation12 + $0x388] sm:$0xff]  ;;  %v3128_v22 = vld [vmem:[#allocation12 + $0x380] sm:$0xff] }
  0xe1   :  { %v2192_v6 = vadd.f32 %v3198_v24, %v2191_v48  ;;  %v2187_v24 = vrot.slane %v2186_v16, 2 }
  0xe2   :  { %v2156_v29 = vadd.f32 %v3200_v39, %v2155_v63  ;;  %v2172_v39 = vadd.f32 %v2171_v5, %v2170_v47  ;;  %v2142_v58 = vadd.f32 %v2141_v32, %v2140_v54  ;;  %v2153_v1 = vrot.slane %v2152_v43, 1  ;;  %v222_v32 = vld [vmem:[#allocation8 + $0x1d8] sm:$0xff] }
  0xe3   :  { %v3631_v62 = vpop.f32.mrf.mxu3  ;;  %v2193_v37 = vrot.slane %v2192_v6, 2  ;;  %v2188_v50 = vadd.f32 %v2187_v24, %v2186_v16  ;;  %v2148_v5 = vadd.f32 %v2147_v52, %v3629_v11  ;;  %v318_v49 = vpack.c.bf16 %v222_v32, %v206_v31 }
  0xe4   :  { %v2157_v48 = vrot.slane %v2156_v29, 2  ;;  %v2217_v59 = vmul.f32 %v3640_v26, %v2172_v39 }
  0xe5   :  { %v602_v9 = vpop.f32.mrf.mxu2  ;;  %v3634_v28 = vpop.f32.mrf.mxu0  ;;  %v2194_v46 = vadd.f32 %v2193_v37, %v2192_v6  ;;  %v2189_v16 = vrot.slane %v2188_v50, 1 }
  0xe6   :  { %v3202_v21 = vpop.eup %3201  ;;  %v603_v23 = vadd.f32 %v3583_v33, %v602_v9  ;;  %v3130_v33 = vld [vmem:[#allocation12 + $0x390] sm:$0xff]  ;;  %v2158_v54 = vadd.f32 %v2157_v48, %v2156_v29  ;;  %v2300_v29 = vsel %vm486_vm1, %v2217_v59, %v2216_v4 }
  0xe7   :  { %v2197_v30 = vrot.slane %v3202_v21, 4  ;;  %2052 = vmatpush.bf16.msra.mxu0 %v3130_v33  ;;  %v2195_v6 = vrot.slane %v2194_v46, 1  ;;  %v2190_v37 = vadd.f32 %v2189_v16, %v2188_v50 }
  0xe8   :  { %3203 = vtanh.f32 %v603_v23  ;;  %1891 = vmatmul.bf16.gmra.mxu3 %v331_v18  ;;  %1949 = vmatmul.bf16.gmra.mxu0 %v333_v7  ;;  %v344_v18 = vpack.c.bf16 %v280_v61, %v264_v60  ;;  %v2283_v7 = vsel %vm495_vm4, %v2142_v58, %v2282_v3  ;;  %v2159_v11 = vrot.slane %v2158_v54, 1  ;;  %v3676_v61 = vld [vmem:[%s3862_s9] ss:$0 sm:$0xff] }
  0xe9   :  { %v2198_v38 = vadd.f32 %v3202_v21, %v2197_v30  ;;  %v283_v21 = vld [vmem:[#allocation8 + $0x3c0] sm:$0xff]  ;;  %v2184_v30 = vadd.f32 %v2183_v8, %v2182_v42  ;;  %v2196_v40 = vadd.f32 %v2195_v6, %v2194_v46  ;;  %v2220_v4 = vmul.f32 %v3640_v26, %v2190_v37  ;;  %v172_v6 = vld [vmem:[#allocation8 + $0x48] sm:$0xff] }
  0xea   :  { %1968 = vmatmul.bf16.vlgmr.msrb.gmra.mxu2 %v302_v12  ;;  %v519_v23 = vpop.f32.mrf.mxu1  ;;  %v2154_v12 = vadd.f32 %v2153_v1, %v2152_v43  ;;  %v347_v39 = vpack.c.bf16 %v283_v21, %v267_v20  ;;  %v349_v43 = vpack.c.bf16 %v285_v19, %v269_v15  ;;  %v2160_v52 = vadd.f32 %v2159_v11, %v2158_v54  ;;  %v177_v15 = vld [vmem:[#allocation8 + $0x70] sm:$0xff]  ;;  %v3127_v11 = vld [vmem:[#allocation12 + $0x378] sm:$0xff] }
  0xeb   :  { %v2199_v44 = vrot.slane %v2198_v38, 2  ;;  %v3643_v51 = vpop.f32.mrf.mxu3  ;;  %2053 = vmatpush.bf16.msra.mxu0 %v3129_v56  ;;  %v520_v27 = vadd.f32 %v3573_v25, %v519_v23  ;;  %v2219_v36 = vmul.f32 %v3640_v26, %v2184_v30  ;;  %v2301_v46 = vsel %vm489_vm2, %v2218_v35, %v2300_v29  ;;  %v193_v19 = vld [vmem:[#allocation8 + $0xf0] sm:$0xff]  ;;  %v238_v30 = vld [vmem:[#allocation8 + $0x258] sm:$0xff]  ;;  %2018 = vmatpush.bf16.msra.mxu1 %v3127_v11 }
  0xec   :  { %v305_v32 = vpack.c.bf16 %v193_v19, %v177_v15  ;;  %v3140_v15 = vld [vmem:[#allocation12 + $0x3e0] sm:$0xff] }
  0xed   :  { %v3647_v47 = vpop.f32.mrf.mxu2  ;;  %v2200_v45 = vadd.f32 %v2199_v44, %v2198_v38  ;;  %v3650_v63 = vpop.f32.mrf.mxu0  ;;  %v2284_v38 = vsel %vm498_vm5, %v2148_v5, %v2283_v7  ;;  %3205 = vtanh.f32 %v520_v27  ;;  %1809 = vmatmul.bf16.gmra.mxu1 %v344_v18  ;;  %v2302_v8 = vsel %vm492_vm3, %v2219_v36, %v2301_v46  ;;  %v254_v27 = vld [vmem:[#allocation8 + $0x2d8] sm:$0xff]  ;;  %v3125_v36 = vld [vmem:[#allocation12 + $0x368] sm:$0xff] }
  0xee   :  { %v3204_v57 = vpop.eup %3203  ;;  %v2285_v58 = vsel %vm501_vm6, %v2154_v12, %v2284_v38  ;;  %v2303_v13 = vsel %vm495_vm4, %v2220_v4, %v2302_v8  ;;  %v1651_v7 = vadd.f32 %v3676_v61, %v3597_v2  ;;  %v191_v12 = vld [vmem:[#allocation8 + $0xe0] sm:$0xff]  ;;  %v334_v38 = vpack.c.bf16 %v254_v27, %v238_v30  ;;  %v209_v8 = vld [vmem:[#allocation8 + $0x170] sm:$0xff]  ;;  %v3139_v27 = vld [vmem:[#allocation12 + $0x3d8] sm:$0xff] }
  0xef   :  { %v2203_v0 = vrot.slane %v3204_v57, 4  ;;  %v2201_v14 = vrot.slane %v2200_v45, 1  ;;  %2054 = vmatpush.bf16.msra.mxu0 %v3128_v22  ;;  %v3679_v1 = vsel %vm504_vm7, %v2160_v52, %v2285_v58  ;;  %v175_v22 = vld [vmem:[#allocation8 + $0x60] sm:$0xff]  ;;  %v220_v58 = vld [vmem:[#allocation8 + $0x1c8] sm:$0xff]  ;;  %v1656_v46 = vadd.f32 %v3676_v61, %v3621_v17 }
  0xf0   :  { %v303_v31 = vpack.c.bf16 %v191_v12, %v175_v22  ;;  %v1658_v30 = vadd.f32 %v3676_v61, %v3631_v62 }
  0xf1   :  { %v2204_v9 = vadd.f32 %v3204_v57, %v2203_v0  ;;  %v2202_v48 = vadd.f32 %v2201_v14, %v2200_v45  ;;  %v2221_v57 = vmul.f32 %v3640_v26, %v2196_v40  ;;  %v3126_v40 = vld [vmem:[#allocation12 + $0x370] sm:$0xff] }
  0xf2   :  { %v521_v59 = vpop.f32.mrf.mxu1  ;;  %2019 = vmatpush.bf16.msra.mxu1 %v3126_v40  ;;  %v236_v40 = vld [vmem:[#allocation8 + $0x248] sm:$0xff] }
  0xf3   :  { %v2205_v24 = vrot.slane %v2204_v9, 2  ;;  %v3659_v33 = vpop.f32.mrf.mxu3  ;;  %v2222_v60 = vmul.f32 %v3640_v26, %v2202_v48  ;;  %v3671_v45 = vpop.eup %3205  ;;  %v2304_v16 = vsel %vm498_vm5, %v2221_v57, %v2303_v13  ;;  %v3124_v57 = vld [vmem:[#allocation12 + $0x360] sm:$0xff]  ;;  %v3141_v13 = vld [vmem:[#allocation12 + $0x3e8] sm:$0xff] }
  0xf4   :  { %2384 = vmatpush.xpose.msrb.mxu3 %v3671_v45  ;;  %v2288_v0 = vmul.f32 %v3671_v45, %v3679_v1 }
  0xf5   :  { %v2206_v42 = vadd.f32 %v2205_v24, %v2204_v9  ;;  %v3661_v44 = vpop.f32.mrf.mxu2  ;;  %v3663_v25 = vpop.f32.mrf.mxu0  ;;  %v188_v9 = vld [vmem:[#allocation8 + $0xc8] sm:$0xff] }
  0xf6   :  { %2289 = vadd.xlane.f32.xlu0 %v2288_v0  ;;  %v300_v21 = vpack.c.bf16 %v188_v9, %v172_v6  ;;  %2020 = vmatpush.bf16.msra.mxu1 %v3125_v36  ;;  %v225_v0 = vld [vmem:[#allocation8 + $0x1f0] sm:$0xff]  ;;  %v270_v6 = vld [vmem:[#allocation8 + $0x358] sm:$0xff]  ;;  %v3120_v36 = vld [vmem:[#allocation12 + $0x340] sm:$0xff] }
  0xf7   :  { %v2207_v50 = vrot.slane %v2206_v42, 1  ;;  %v286_v9 = vld [vmem:[#allocation8 + $0x3d8] sm:$0xff]  ;;  %v321_v22 = vpack.c.bf16 %v225_v0, %v209_v8  ;;  %v3136_v0 = vld [vmem:[#allocation12 + $0x3c0] sm:$0xff] }
  0xf8   :  { %1896 = vmatmul.bf16.gmra.mxu3 %v347_v39  ;;  %1954 = vmatmul.bf16.gmra.mxu0 %v349_v43  ;;  %v1653_v43 = vadd.f32 %v3676_v61, %v3613_v41  ;;  %v3142_v41 = vld [vmem:[#allocation12 + $0x3f0] sm:$0xff]  ;;  %v350_v12 = vpack.c.bf16 %v286_v9, %v270_v6  ;;  %v226_v6 = vld [vmem:[#allocation8 + $0x1f8] sm:$0xff]  ;;  %v1663_v9 = vadd.f32 %v3676_v61, %v3659_v33 }
  0xf9   :  { %v2208_v56 = vadd.f32 %v2207_v50, %v2206_v42  ;;  %v204_v50 = vld [vmem:[#allocation8 + $0x148] sm:$0xff] }
  0xfa   :  { %1973 = vmatmul.bf16.gmra.mxu2 %v318_v49  ;;  %v1679_v14 = vpop.f32.mrf.mxu1  ;;  %v316_v59 = vpack.c.bf16 %v220_v58, %v204_v50  ;;  %2021 = vmatpush.bf16.msra.mxu1 %v3124_v57  ;;  %v255_v50 = vld [vmem:[#allocation8 + $0x2e0] sm:$0xff] }
  0xfb   :  { %v2223_v3 = vmul.f32 %v3640_v26, %v2208_v56  ;;  %v3686_v54 = vpop.f32.mrf.mxu3  ;;  %v2305_v26 = vsel %vm501_vm6, %v2222_v60, %v2304_v16  ;;  %v1680_v29 = vadd.f32 %v1679_v14, %v1651_v7  ;;  %v207_v60 = vld [vmem:[#allocation8 + $0x160] sm:$0xff]  ;;  %v3123_v7 = vld [vmem:[#allocation12 + $0x358] sm:$0xff] }
  0xfd   :  { %v3690_v5 = vpop.f32.mrf.mxu2  ;;  %v3692_v18 = vpop.f32.mrf.mxu0  ;;  %v3698_v20 = vsel %vm504_vm7, %v2223_v3, %v2305_v26  ;;  %1910 = vmatmul.bf16.vlgmr.msrb.gmra.mxu1 %v300_v21  ;;  %v1709_v2 = vadd.f32 %v3591_v53, %v1680_v29  ;;  %v3143_v53 = vld [vmem:[#allocation12 + $0x3f8] sm:$0xff]  ;;  %v223_v3 = vld [vmem:[#allocation8 + $0x1e0] sm:$0xff]  ;;  %v3122_v29 = vld [vmem:[#allocation12 + $0x350] sm:$0xff] }
  0xfe   :  { %v2308_v23 = vmul.f32 %v3671_v45, %v3698_v20  ;;  %3146 = vmatpush.bf16.msra.mxu2 %v3143_v53  ;;  %2076 = vmatpush.bf16.msrb.mxu0 %v3143_v53  ;;  %v319_v21 = vpack.c.bf16 %v223_v3, %v207_v60  ;;  %v1661_v53 = vadd.f32 %v3676_v61, %v3643_v51 }
  0xff   :  { %v3710_v39 = vadd.f32 %v3647_v47, %v1709_v2  ;;  %2022 = vmatpush.bf16.msra.mxu1 %v3123_v7 }
 0x100   :  { %2309 = vadd.xlane.f32.xlu0 %v2308_v23 }
 0x102   :  { %v1681_v42 = vpop.f32.mrf.mxu1  ;;  %3147 = vmatpush.bf16.msra.mxu2 %v3142_v41  ;;  %2077 = vmatpush.bf16.msrb.mxu0 %v3142_v41  ;;  %v241_v41 = vld [vmem:[#allocation8 + $0x270] sm:$0xff] }
 0x103   :  { %v3702_v24 = vpop.f32.mrf.mxu3  ;;  %v1682_v48 = vadd.f32 %v1681_v42, %v1653_v43  ;;  %2023 = vmatpush.bf16.msra.mxu1 %v3122_v29  ;;  %v252_v43 = vld [vmem:[#allocation8 + $0x2c8] sm:$0xff]  ;;  %v3138_v42 = vld [vmem:[#allocation12 + $0x3d0] sm:$0xff]  ;;  %v1666_v29 = vadd.f32 %v3676_v61, %v3686_v54 }
 0x105   :  { %v3705_v35 = vpop.f32.mrf.mxu2  ;;  %v3707_v37 = vpop.f32.mrf.mxu0  ;;  %v1711_v52 = vadd.f32 %v3603_v10, %v1682_v48 }
 0x106   :  { %3148 = vmatpush.bf16.msra.mxu2 %v3141_v13  ;;  %2078 = vmatpush.bf16.msrb.mxu0 %v3141_v13 }
 0x107   :  { %v1740_v56 = vadd.f32 %v3661_v44, %v1711_v52  ;;  %v332_v52 = vpack.c.bf16 %v252_v43, %v236_v40 }
 0x108   :  { %1997 = vmatmul.bf16.vlgmr.msra.gmra.mxu3 %v303_v31  ;;  %2055 = vmatmul.bf16.vlgmr.msra.gmra.mxu0 %v305_v32  ;;  %v3121_v31 = vld [vmem:[#allocation12 + $0x348] sm:$0xff] }
 0x109   :  { %2024 = vmatpush.bf16.msra.mxu1 %v3121_v31  ;;  %v289_v31 = vld [vmem:[#allocation8 + $0x3f0] sm:$0xff] }
 0x10a   :  { %1978 = vmatmul.bf16.gmra.mxu2 %v334_v38  ;;  %v1684_v10 = vpop.f32.mrf.mxu1  ;;  %2079 = vmatpush.bf16.msrb.mxu0 %v3140_v15 }
 0x10b   :  { %v3714_v49 = vpop.f32.mrf.mxu3  ;;  %v1685_v16 = vadd.f32 %v1684_v10, %v1656_v46  ;;  %3149 = vmatpush.bf16.msra.mxu2 %v3140_v15  ;;  %v257_v46 = vld [vmem:[#allocation8 + $0x2f0] sm:$0xff] }
 0x10c   :  { %v337_v3 = vpack.c.bf16 %v257_v46, %v241_v41 }
 0x10d   :  { %v3717_v47 = vpop.f32.mrf.mxu2  ;;  %v3719_v4 = vpop.f32.mrf.mxu0  ;;  %1915 = vmatmul.bf16.gmra.mxu1 %v316_v59  ;;  %v1714_v17 = vadd.f32 %v3618_v55, %v1685_v16  ;;  %v210_v16 = vld [vmem:[#allocation8 + $0x178] sm:$0xff] }
 0x10e   :  { %2080 = vmatpush.bf16.msrb.mxu0 %v3139_v27  ;;  %2025 = vmatpush.bf16.msra.mxu1 %v3120_v36  ;;  %v242_v36 = vld [vmem:[#allocation8 + $0x278] sm:$0xff] }
 0x10f   :  { %v1743_v19 = vadd.f32 %v3690_v5, %v1714_v17  ;;  %3150 = vmatpush.bf16.msra.mxu2 %v3139_v27 }
 0x112   :  { %v1686_v55 = vpop.f32.mrf.mxu1  ;;  %2081 = vmatpush.bf16.msrb.mxu0 %v3138_v42 }
 0x113   :  { %v1768_v26 = vpop.f32.mrf.mxu3  ;;  %v1687_v11 = vadd.f32 %v1686_v55, %v1658_v30  ;;  %3151 = vmatpush.bf16.msra.mxu2 %v3138_v42  ;;  %v271_v55 = vld [vmem:[#allocation8 + $0x360] sm:$0xff] }
 0x114   :  { %v3725_v44 = vadd.f32 %v1768_v26, %v1740_v56  ;;  %v3137_v56 = vld [vmem:[#allocation12 + $0x3c8] sm:$0xff] }
 0x115   :  { %v3727_v14 = vpop.f32.mrf.mxu2  ;;  %v3729_v23 = vpop.f32.mrf.mxu0  ;;  %v1716_v32 = vadd.f32 %v3625_v34, %v1687_v11  ;;  %v239_v34 = vld [vmem:[#allocation8 + $0x260] sm:$0xff] }
 0x116   :  { %2082 = vmatpush.bf16.msrb.mxu0 %v3137_v56  ;;  %v287_v11 = vld [vmem:[#allocation8 + $0x3e0] sm:$0xff] }
 0x117   :  { %v1745_v48 = vadd.f32 %v3705_v35, %v1716_v32  ;;  %3152 = vmatpush.bf16.msra.mxu2 %v3137_v56  ;;  %v335_v35 = vpack.c.bf16 %v255_v50, %v239_v34  ;;  %v351_v42 = vpack.c.bf16 %v287_v11, %v271_v55  ;;  %v1668_v34 = vadd.f32 %v3676_v61, %v3702_v24 }
 0x118   :  { %2002 = vmatmul.bf16.gmra.mxu3 %v319_v21  ;;  %2060 = vmatmul.bf16.gmra.mxu0 %v321_v22 }
 0x11a   :  { %1983 = vmatmul.bf16.gmra.mxu2 %v350_v12  ;;  %v1689_v58 = vpop.f32.mrf.mxu1  ;;  %2083 = vmatpush.bf16.msrb.mxu0 %v3136_v0  ;;  %v268_v12 = vld [vmem:[#allocation8 + $0x348] sm:$0xff] }
 0x11b   :  { %v1771_v2 = vpop.f32.mrf.mxu3  ;;  %v1690_v57 = vadd.f32 %v1689_v58, %v1661_v53  ;;  %3153 = vmatpush.bf16.msra.mxu2 %v3136_v0  ;;  %v178_v0 = vld [vmem:[#allocation8 + $0x78] sm:$0xff] }
 0x11c   :  { %v3735_v5 = vadd.f32 %v1771_v2, %v1743_v19  ;;  %v273_v2 = vld [vmem:[#allocation8 + $0x370] sm:$0xff] }
 0x11d   :  { %v3737_v38 = vpop.f32.mrf.mxu2  ;;  %v3739_v62 = vpop.f32.mrf.mxu0  ;;  %1920 = vmatmul.bf16.gmra.mxu1 %v332_v52  ;;  %v1719_v51 = vadd.f32 %v3634_v28, %v1690_v57  ;;  %v322_v28 = vpack.c.bf16 %v226_v6, %v210_v16  ;;  %v353_v53 = vpack.c.bf16 %v289_v31, %v273_v2  ;;  %v258_v52 = vld [vmem:[#allocation8 + $0x2f8] sm:$0xff]  ;;  %v176_v57 = vld [vmem:[#allocation8 + $0x68] sm:$0xff] }
 0x11e   :  { %v338_v50 = vpack.c.bf16 %v258_v52, %v242_v36 }
 0x11f   :  { %v1748_v13 = vadd.f32 %v3717_v47, %v1719_v51  ;;  %v284_v47 = vld [vmem:[#allocation8 + $0x3c8] sm:$0xff] }
 0x120   :  { %v348_v30 = vpack.c.bf16 %v284_v47, %v268_v12 }
 0x122   :  { %v1691_v26 = vpop.f32.mrf.mxu1 }
 0x123   :  { %v1773_v59 = vpop.f32.mrf.mxu3  ;;  %v1692_v7 = vadd.f32 %v1691_v26, %v1663_v9 }
 0x124   :  { %v3745_v60 = vadd.f32 %v1773_v59, %v1745_v48  ;;  %v192_v59 = vld [vmem:[#allocation8 + $0xe8] sm:$0xff] }
 0x125   :  { %v1754_v10 = vpop.f32.mrf.mxu2  ;;  %v3747_v8 = vpop.f32.mrf.mxu0  ;;  %v1721_v21 = vadd.f32 %v3650_v63, %v1692_v7  ;;  %v304_v61 = vpack.c.bf16 %v192_v59, %v176_v57 }
 0x127   :  { %v1750_v33 = vadd.f32 %v3727_v14, %v1721_v21 }
 0x128   :  { %2007 = vmatmul.bf16.gmra.mxu3 %v335_v35  ;;  %2065 = vmatmul.bf16.gmra.mxu0 %v337_v3  ;;  %v1767_v35 = vadd.f32 %v3714_v49, %v3710_v39 }
 0x12a   :  { %2089 = vmatmul.bf16.vlgmr.msra.gmra.mxu2 %v322_v28  ;;  %v1694_v27 = vpop.f32.mrf.mxu1 }
 0x12b   :  { %v1776_v17 = vpop.f32.mrf.mxu3  ;;  %v1695_v32 = vadd.f32 %v1694_v27, %v1666_v29 }
 0x12c   :  { %v3753_v22 = vadd.f32 %v1776_v17, %v1748_v13  ;;  %v194_v13 = vld [vmem:[#allocation8 + $0xf8] sm:$0xff] }
 0x12d   :  { %v3755_v15 = vpop.f32.mrf.mxu0  ;;  %v1853_v19 = vpop.f32.mrf.mxu2  ;;  %1925 = vmatmul.bf16.gmra.mxu1 %v348_v30  ;;  %v1724_v40 = vadd.f32 %v3663_v25, %v1695_v32  ;;  %v306_v28 = vpack.c.bf16 %v194_v13, %v178_v0  ;;  %v290_v17 = vld [vmem:[#allocation8 + $0x3f8] sm:$0xff]  ;;  %v224_v30 = vld [vmem:[#allocation8 + $0x1e8] sm:$0xff] }
 0x12e   :  { %v272_v13 = vld [vmem:[#allocation8 + $0x368] sm:$0xff] }
 0x12f   :  { %v1753_v54 = vadd.f32 %v3737_v38, %v1724_v40 }
 0x132   :  { %v1696_v58 = vpop.f32.mrf.mxu1 }
 0x133   :  { %v1778_v63 = vpop.f32.mrf.mxu3  ;;  %v1697_v41 = vadd.f32 %v1696_v58, %v1668_v34  ;;  %v256_v34 = vld [vmem:[#allocation8 + $0x2e8] sm:$0xff] }
 0x134   :  { %v3761_v43 = vadd.f32 %v1778_v63, %v1750_v33 }
 0x135   :  { %v3763_v48 = vpop.f32.mrf.mxu0  ;;  %v1855_v14 = vpop.f32.mrf.mxu2  ;;  %v1726_v46 = vadd.f32 %v3692_v18, %v1697_v41 }
 0x137   :  { %v1755_v51 = vadd.f32 %v1754_v10, %v1726_v46  ;;  %v274_v10 = vld [vmem:[#allocation8 + $0x378] sm:$0xff] }
 0x138   :  { %2012 = vmatmul.bf16.gmra.mxu3 %v351_v42  ;;  %2070 = vmatmul.bf16.gmra.mxu0 %v353_v53  ;;  %v354_v39 = vpack.c.bf16 %v290_v17, %v274_v10 }
 0x13a   :  { %2094 = vmatmul.bf16.gmra.mxu2 %v338_v50  ;;  %v1795_v24 = vpop.f32.mrf.mxu1 }
 0x13b   :  { %v1781_v25 = vpop.f32.mrf.mxu3  ;;  %v1796_v16 = vadd.f32 %v1795_v24, %v1767_v35 }
 0x13c   :  { %v3769_v56 = vadd.f32 %v1781_v25, %v1753_v54 }
 0x13d   :  { %v3771_v38 = vpop.f32.mrf.mxu0  ;;  %v1858_v3 = vpop.f32.mrf.mxu2  ;;  %2026 = vmatmul.bf16.vlgmr.msra.gmra.mxu1 %v304_v61  ;;  %v1825_v18 = vadd.f32 %v3707_v37, %v1796_v16  ;;  %v208_v37 = vld [vmem:[#allocation8 + $0x168] sm:$0xff] }
 0x13e   :  { %v320_v11 = vpack.c.bf16 %v224_v30, %v208_v37  ;;  %v288_v16 = vld [vmem:[#allocation8 + $0x3e8] sm:$0xff] }
 0x13f   :  { %v1854_v7 = vadd.f32 %v1853_v19, %v1825_v18 }
 0x142   :  { %v1797_v49 = vpop.f32.mrf.mxu1 }
 0x143   :  { %v1783_v6 = vpop.f32.mrf.mxu3  ;;  %v1798_v21 = vadd.f32 %v1797_v49, %v3725_v44 }
 0x144   :  { %v3776_v9 = vadd.f32 %v1783_v6, %v1755_v51 }
 0x145   :  { %v3778_v26 = vpop.f32.mrf.mxu0  ;;  %v1860_v47 = vpop.f32.mrf.mxu2  ;;  %v1827_v29 = vadd.f32 %v3719_v4, %v1798_v21 }
 0x147   :  { %v1856_v27 = vadd.f32 %v1855_v14, %v1827_v29  ;;  %v240_v14 = vld [vmem:[#allocation8 + $0x268] sm:$0xff] }
 0x148   :  { %2084 = vmatmul.bf16.vlgmr.msrb.gmra.mxu0 %v306_v28  ;;  %v336_v41 = vpack.c.bf16 %v256_v34, %v240_v14 }
 0x14a   :  { %2099 = vmatmul.bf16.gmra.mxu2 %v354_v39  ;;  %v1800_v19 = vpop.f32.mrf.mxu1 }
 0x14b   :  { %v1882_v12 = vpop.f32.mrf.mxu3  ;;  %v1801_v2 = vadd.f32 %v1800_v19, %v3735_v5 }
 0x14c   :  { %v1883_v33 = vadd.f32 %v1882_v12, %v1854_v7 }
 0x14d   :  { %v3782_v55 = vpop.f32.mrf.mxu0  ;;  %2031 = vmatmul.bf16.gmra.mxu1 %v320_v11  ;;  %v1830_v32 = vadd.f32 %v3729_v23, %v1801_v2  ;;  %v1863_v40 = vpop.f32.mrf.mxu2 }
 0x14f   :  { %v1859_v42 = vadd.f32 %v1858_v3, %v1830_v32 }
 0x152   :  { %v1802_v53 = vpop.f32.mrf.mxu1 }
 0x153   :  { %v1884_v31 = vpop.f32.mrf.mxu3  ;;  %v1803_v4 = vadd.f32 %v1802_v53, %v3745_v60 }
 0x154   :  { %v1885_v44 = vadd.f32 %v1884_v31, %v1856_v27 }
 0x155   :  { %v1945_v63 = vpop.f32.mrf.mxu0  ;;  %v1832_v36 = vadd.f32 %v3739_v62, %v1803_v4  ;;  %v1865_v5 = vpop.f32.mrf.mxu2 }
 0x157   :  { %v1861_v58 = vadd.f32 %v1860_v47, %v1832_v36 }
 0x15a   :  { %v1805_v25 = vpop.f32.mrf.mxu1 }
 0x15b   :  { %v1887_v54 = vpop.f32.mrf.mxu3  ;;  %v1806_v23 = vadd.f32 %v1805_v25, %v3753_v22  ;;  %v352_v22 = vpack.c.bf16 %v288_v16, %v272_v13 }
 0x15c   :  { %v1888_v52 = vadd.f32 %v1887_v54, %v1859_v42 }
 0x15d   :  { %v1947_v50 = vpop.f32.mrf.mxu0  ;;  %2036 = vmatmul.bf16.gmra.mxu1 %v336_v41  ;;  %v1835_v57 = vadd.f32 %v3747_v8, %v1806_v23  ;;  %v1868_v61 = vpop.f32.mrf.mxu2 }
 0x15f   :  { %v1864_v60 = vadd.f32 %v1863_v40, %v1835_v57 }
 0x162   :  { %v1807_v35 = vpop.f32.mrf.mxu1 }
 0x163   :  { %v1889_v46 = vpop.f32.mrf.mxu3  ;;  %v1808_v62 = vadd.f32 %v1807_v35, %v3761_v43 }
 0x164   :  { %v1890_v59 = vadd.f32 %v1889_v46, %v1861_v58 }
 0x165   :  { %v1950_v51 = vpop.f32.mrf.mxu0  ;;  %v1837_v3 = vadd.f32 %v3755_v15, %v1808_v62  ;;  %v1870_v8 = vpop.f32.mrf.mxu2 }
 0x167   :  { %v1866_v18 = vadd.f32 %v1865_v5, %v1837_v3 }
 0x16a   :  { %v1810_v28 = vpop.f32.mrf.mxu1 }
 0x16b   :  { %v1892_v24 = vpop.f32.mrf.mxu3  ;;  %v1811_v7 = vadd.f32 %v1810_v28, %v3769_v56 }
 0x16c   :  { %v1893_v0 = vadd.f32 %v1892_v24, %v1864_v60 }
 0x16d   :  { %v1952_v6 = vpop.f32.mrf.mxu0  ;;  %2041 = vmatmul.bf16.gmra.mxu1 %v352_v22  ;;  %v1840_v17 = vadd.f32 %v3763_v48, %v1811_v7  ;;  %v1969_v47 = vpop.f32.mrf.mxu2 }
 0x16f   :  { %v1869_v43 = vadd.f32 %v1868_v61, %v1840_v17 }
 0x172   :  { %v1812_v21 = vpop.f32.mrf.mxu1 }
 0x173   :  { %v1894_v10 = vpop.f32.mrf.mxu3  ;;  %v1813_v15 = vadd.f32 %v1812_v21, %v3776_v9 }
 0x174   :  { %v1895_v39 = vadd.f32 %v1894_v10, %v1866_v18 }
 0x175   :  { %v1955_v49 = vpop.f32.mrf.mxu0  ;;  %v1842_v12 = vadd.f32 %v3771_v38, %v1813_v15  ;;  %v1971_v2 = vpop.f32.mrf.mxu2 }
 0x177   :  { %v1871_v37 = vadd.f32 %v1870_v8, %v1842_v12 }
 0x17a   :  { %v1911_v30 = vpop.f32.mrf.mxu1 }
 0x17b   :  { %v1912_v27 = vadd.f32 %v1911_v30, %v1883_v33  ;;  %v1897_v34 = vpop.f32.mrf.mxu3 }
 0x17d   :  { %v1957_v29 = vpop.f32.mrf.mxu0  ;;  %v1941_v56 = vadd.f32 %v3778_v26, %v1912_v27  ;;  %v1974_v9 = vpop.f32.mrf.mxu2 }
 0x17f   :  { %v1970_v19 = vadd.f32 %v1969_v47, %v1941_v56 }
 0x182   :  { %v1913_v31 = vpop.f32.mrf.mxu1 }
 0x183   :  { %v1914_v48 = vadd.f32 %v1913_v31, %v1885_v44  ;;  %v1899_v23 = vpop.f32.mrf.mxu3 }
 0x185   :  { %v2056_v11 = vpop.f32.mrf.mxu0  ;;  %v1943_v32 = vadd.f32 %v3782_v55, %v1914_v48  ;;  %v1976_v58 = vpop.f32.mrf.mxu2 }
 0x187   :  { %v1972_v42 = vadd.f32 %v1971_v2, %v1943_v32 }
 0x18a   :  { %v1916_v53 = vpop.f32.mrf.mxu1 }
 0x18b   :  { %v1917_v4 = vadd.f32 %v1916_v53, %v1888_v52 }
 0x18d   :  { %v2058_v40 = vpop.f32.mrf.mxu0  ;;  %v1946_v38 = vadd.f32 %v1945_v63, %v1917_v4  ;;  %v1979_v46 = vpop.f32.mrf.mxu2 }
 0x18f   :  { %v1975_v36 = vadd.f32 %v1974_v9, %v1946_v38 }
 0x192   :  { %v1918_v14 = vpop.f32.mrf.mxu1 }
 0x193   :  { %v1919_v33 = vadd.f32 %v1918_v14, %v1890_v59  ;;  %v1998_v59 = vpop.f32.mrf.mxu3 }
 0x194   :  { %v1999_v7 = vadd.f32 %v1998_v59, %v1970_v19 }
 0x195   :  { %v2061_v54 = vpop.f32.mrf.mxu0  ;;  %v1948_v26 = vadd.f32 %v1947_v50, %v1919_v33  ;;  %v3808_v61 = vpop.f32.mrf.mxu2  ;;  %v1898_v50 = vadd.f32 %v1897_v34, %v1869_v43 }
 0x197   :  { %v1977_v41 = vadd.f32 %v1976_v58, %v1948_v26 }
 0x19a   :  { %v1921_v25 = vpop.f32.mrf.mxu1 }
 0x19b   :  { %v1922_v44 = vadd.f32 %v1921_v25, %v1893_v0  ;;  %v2000_v13 = vpop.f32.mrf.mxu3 }
 0x19c   :  { %v2001_v15 = vadd.f32 %v2000_v13, %v1972_v42 }
 0x19d   :  { %v3798_v5 = vpop.f32.mrf.mxu0  ;;  %v3800_v55 = vadd.f32 %v1950_v51, %v1922_v44  ;;  %v1900_v51 = vadd.f32 %v1899_v23, %v1871_v37  ;;  %v3814_v16 = vpop.f32.mrf.mxu2 }
 0x1a2   :  { %v1923_v52 = vpop.f32.mrf.mxu1 }
 0x1a3   :  { %v1924_v63 = vadd.f32 %v1923_v52, %v1895_v39  ;;  %v2003_v17 = vpop.f32.mrf.mxu3 }
 0x1a4   :  { %v2004_v19 = vadd.f32 %v2003_v17, %v1975_v36 }
 0x1a5   :  { %v3802_v57 = vpop.f32.mrf.mxu0  ;;  %v3804_v60 = vadd.f32 %v1952_v6, %v1924_v63  ;;  %v3820_v39 = vpop.f32.mrf.mxu2 }
 0x1aa   :  { %v1926_v62 = vpop.f32.mrf.mxu1 }
 0x1ab   :  { %v1927_v24 = vadd.f32 %v1926_v62, %v1898_v50  ;;  %v2005_v27 = vpop.f32.mrf.mxu3 }
 0x1ac   :  { %v2006_v33 = vadd.f32 %v2005_v27, %v1977_v41 }
 0x1ad   :  { %v3806_v35 = vpop.f32.mrf.mxu0  ;;  %v3810_v3 = vadd.f32 %v1955_v49, %v1927_v24  ;;  %v2090_v37 = vpop.f32.mrf.mxu2 }
 0x1b2   :  { %v1928_v18 = vpop.f32.mrf.mxu1 }
 0x1b3   :  { %v1929_v22 = vadd.f32 %v1928_v18, %v1900_v51  ;;  %v2008_v14 = vpop.f32.mrf.mxu3 }
 0x1b5   :  { %v3812_v0 = vpop.f32.mrf.mxu0  ;;  %v3816_v6 = vadd.f32 %v1957_v29, %v1929_v22  ;;  %v2092_v4 = vpop.f32.mrf.mxu2 }
 0x1ba   :  { %v2027_v8 = vpop.f32.mrf.mxu1 }
 0x1bb   :  { %v2028_v10 = vadd.f32 %v2027_v8, %v1999_v7  ;;  %v2010_v41 = vpop.f32.mrf.mxu3 }
 0x1bd   :  { %v3818_v28 = vpop.f32.mrf.mxu0  ;;  %v2057_v49 = vadd.f32 %v2056_v11, %v2028_v10  ;;  %v2095_v24 = vpop.f32.mrf.mxu2 }
 0x1c2   :  { %v2029_v12 = vpop.f32.mrf.mxu1 }
 0x1c3   :  { %v2030_v47 = vadd.f32 %v2029_v12, %v2001_v15 }
 0x1c5   :  { %v2085_v43 = vpop.f32.mrf.mxu0  ;;  %v2059_v30 = vadd.f32 %v2058_v40, %v2030_v47 }
 0x1c6   :  { %v2086_v21 = vadd.f32 %v2085_v43, %v2057_v49 }
 0x1c8   :  { %3207 = vtanh.f32 %v2086_v21 }
 0x1ca   :  { %v2032_v48 = vpop.f32.mrf.mxu1 }
 0x1cb   :  { %v2033_v53 = vadd.f32 %v2032_v48, %v2004_v19 }
 0x1cd   :  { %v2087_v29 = vpop.f32.mrf.mxu0  ;;  %v2062_v9 = vadd.f32 %v2061_v54, %v2033_v53  ;;  %v1980_v54 = vadd.f32 %v1979_v46, %v3800_v55  ;;  %v1982_v55 = vadd.f32 %v3808_v61, %v3804_v60  ;;  %v1985_v60 = vadd.f32 %v3814_v16, %v3810_v3 }
 0x1ce   :  { %v3208_v56 = vpop.eup %3207  ;;  %v2088_v2 = vadd.f32 %v2087_v29, %v2059_v30  ;;  %v2097_v30 = vpop.f32.mrf.mxu2  ;;  %v1987_v3 = vadd.f32 %v3820_v39, %v3816_v6 }
 0x1cf   :  { %v2224_v31 = vrot.slane %v3208_v56, 4  ;;  %v2091_v42 = vadd.f32 %v2090_v37, %v2062_v9  ;;  %v2009_v51 = vadd.f32 %v2008_v14, %v1980_v54  ;;  %v2011_v12 = vadd.f32 %v2010_v41, %v1982_v55 }
 0x1d0   :  { %3209 = vtanh.f32 %v2088_v2 }
 0x1d1   :  { %v2225_v32 = vadd.f32 %v3208_v56, %v2224_v31  ;;  %3211 = vtanh.f32 %v2091_v42  ;;  %v2013_v56 = vpop.f32.mrf.mxu3 }
 0x1d2   :  { %v2034_v58 = vpop.f32.mrf.mxu1  ;;  %v2014_v9 = vadd.f32 %v2013_v56, %v1985_v60 }
 0x1d3   :  { %v2226_v11 = vrot.slane %v2225_v32, 2  ;;  %v2035_v25 = vadd.f32 %v2034_v58, %v2006_v33 }
 0x1d5   :  { %v2227_v40 = vadd.f32 %v2226_v11, %v2225_v32  ;;  %v2064_v36 = vadd.f32 %v3798_v5, %v2035_v25 }
 0x1d6   :  { %v3210_v38 = vpop.eup %3209 }
 0x1d7   :  { %v2230_v34 = vrot.slane %v3210_v38, 4  ;;  %v2228_v23 = vrot.slane %v2227_v40, 1  ;;  %v3212_v63 = vpop.eup %3211  ;;  %v2093_v59 = vadd.f32 %v2092_v4, %v2064_v36 }
 0x1d8   :  { %v2236_v50 = vrot.slane %v3212_v63, 4 }
 0x1d9   :  { %v2231_v26 = vadd.f32 %v3210_v38, %v2230_v34  ;;  %3213 = vtanh.f32 %v2093_v59  ;;  %v2229_v18 = vadd.f32 %v2228_v23, %v2227_v40  ;;  %v2100_v34 = vpop.f32.mrf.mxu2  ;;  %v2015_v40 = vpop.f32.mrf.mxu3 }
 0x1da   :  { %v2237_v13 = vadd.f32 %v3212_v63, %v2236_v50  ;;  %v2037_v7 = vpop.f32.mrf.mxu1  ;;  %v2016_v36 = vadd.f32 %v2015_v40, %v1987_v3 }
 0x1db   :  { %v2232_v44 = vrot.slane %v2231_v26, 2  ;;  %v2038_v8 = vadd.f32 %v2037_v7, %v2009_v51 }
 0x1dc   :  { %v2238_v10 = vrot.slane %v2237_v13, 2 }
 0x1dd   :  { %v2233_v52 = vadd.f32 %v2232_v44, %v2231_v26  ;;  %v2067_v17 = vadd.f32 %v3802_v57, %v2038_v8 }
 0x1de   :  { %v2239_v49 = vadd.f32 %v2238_v10, %v2237_v13 }
 0x1df   :  { %v2234_v62 = vrot.slane %v2233_v52, 1  ;;  %v3214_v43 = vpop.eup %3213  ;;  %v2096_v46 = vadd.f32 %v2095_v24, %v2067_v17 }
 0x1e0   :  { %v2240_v21 = vrot.slane %v2239_v49, 1  ;;  %v2242_v15 = vrot.slane %v3214_v43, 4 }
 0x1e1   :  { %v2235_v22 = vadd.f32 %v2234_v62, %v2233_v52  ;;  %3215 = vtanh.f32 %v2096_v46  ;;  %v2102_v62 = vpop.f32.mrf.mxu2 }
 0x1e2   :  { %v2241_v47 = vadd.f32 %v2240_v21, %v2239_v49  ;;  %v2243_v37 = vadd.f32 %v3214_v43, %v2242_v15  ;;  %v2039_v27 = vpop.f32.mrf.mxu1 }
 0x1e3   :  { %v2320_v5 = vsel %vm486_vm1, %v2235_v22, %v2229_v18  ;;  %v2040_v29 = vadd.f32 %v2039_v27, %v2011_v12 }
 0x1e4   :  { %v2244_v2 = vrot.slane %v2243_v37, 2  ;;  %v2321_v31 = vsel %vm489_vm2, %v2241_v47, %v2320_v5 }
 0x1e5   :  { %v2069_v57 = vadd.f32 %v3806_v35, %v2040_v29 }
 0x1e6   :  { %v2245_v19 = vadd.f32 %v2244_v2, %v2243_v37  ;;  %v2290_v37 = vpop.xlane.xlu0 %2289 }
 0x1e7   :  { %v3216_v48 = vpop.eup %3215  ;;  %v2098_v61 = vadd.f32 %v2097_v30, %v2069_v57  ;;  %v2291_v29 = vmul.f32 0.17677669, %v2290_v37 }
 0x1e8   :  { %v2246_v32 = vrot.slane %v2245_v19, 1  ;;  %v2248_v53 = vrot.slane %v3216_v48, 4 }
 0x1e9   :  { %3217 = vtanh.f32 %v2098_v61 }
 0x1ea   :  { %v2249_v11 = vadd.f32 %v3216_v48, %v2248_v53  ;;  %v2042_v4 = vpop.f32.mrf.mxu1  ;;  %v2247_v38 = vadd.f32 %v2246_v32, %v2245_v19 }
 0x1eb   :  { %v2043_v42 = vadd.f32 %v2042_v4, %v2014_v9 }
 0x1ec   :  { %v2250_v14 = vrot.slane %v2249_v11, 2  ;;  %v2322_v33 = vsel %vm492_vm3, %v2247_v38, %v2321_v31  ;;  %v2409_v38 = vld [vmem:[#allocation2] sm:$0x1] }
 0x1ed   :  { %v2072_v35 = vadd.f32 %v3812_v0, %v2043_v42  ;;  %3154 = vpush %v2409_v38 }
 0x1ee   :  { %v2251_v58 = vadd.f32 %v2250_v14, %v2249_v11  ;;  %v2310_v30 = vpop.xlane.xlu0 %2309 }
 0x1ef   :  { %v3218_v26 = vpop.eup %3217  ;;  %v2101_v16 = vadd.f32 %v2100_v34, %v2072_v35  ;;  %v2311_v27 = vmul.f32 0.17677669, %v2310_v30 }
 0x1f0   :  { %v2254_v25 = vrot.slane %v3218_v26, 4  ;;  %v2252_v44 = vrot.slane %v2251_v58, 1 }
 0x1f1   :  { %3219 = vtanh.f32 %v2101_v16  ;;  %v2332_v2 = vmax.f32 %v2291_v29, %v2311_v27 }
 0x1f2   :  { %v2255_v23 = vadd.f32 %v3218_v26, %v2254_v25  ;;  %v2044_v52 = vpop.f32.mrf.mxu1  ;;  %v2253_v63 = vadd.f32 %v2252_v44, %v2251_v58 }
 0x1f3   :  { %v2045_v54 = vadd.f32 %v2044_v52, %v2016_v36 }
 0x1f4   :  { %v2256_v59 = vrot.slane %v2255_v23, 2  ;;  %v2323_v50 = vsel %vm495_vm4, %v2253_v63, %v2322_v33 }
 0x1f5   :  { %v2074_v0 = vadd.f32 %v3818_v28, %v2045_v54 }
 0x1f6   :  { %v2257_v24 = vadd.f32 %v2256_v59, %v2255_v23 }
 0x1f7   :  { %v3220_v51 = vpop.eup %3219  ;;  %v2103_v41 = vadd.f32 %v2102_v62, %v2074_v0  ;;  %v2367_v62 = vld [vmem:[%s3863_s10] sm:$0x1] }
 0x1f8   :  { %v2260_v13 = vrot.slane %v3220_v51, 4  ;;  %v2258_v6 = vrot.slane %v2257_v24, 1 }
 0x1f9   :  { %3221 = vtanh.f32 %v2103_v41 }
 0x1fa   :  { %v2259_v39 = vadd.f32 %v2258_v6, %v2257_v24  ;;  %v2261_v18 = vadd.f32 %v3220_v51, %v2260_v13 }
 0x1fc   :  { %v2262_v22 = vrot.slane %v2261_v18, 2  ;;  %v2324_v7 = vsel %vm498_vm5, %v2259_v39, %v2323_v50 }
 0x1fe   :  { %v2263_v8 = vadd.f32 %v2262_v22, %v2261_v18 }
 0x1ff   :  { %v3222_v10 = vpop.eup %3221 }
 0x200   :  { %v2264_v5 = vrot.slane %v2263_v8, 1  ;;  %v2266_v17 = vrot.slane %v3222_v10, 4 }
 0x202   :  { %v2265_v49 = vadd.f32 %v2264_v5, %v2263_v8  ;;  %v2267_v43 = vadd.f32 %v3222_v10, %v2266_v17 }
 0x204   :  { %v2268_v55 = vrot.slane %v2267_v43, 2  ;;  %v2325_v28 = vsel %vm501_vm6, %v2265_v49, %v2324_v7 }
 0x206   :  { %v2269_v46 = vadd.f32 %v2268_v55, %v2267_v43 }
 0x208   :  { %v2270_v21 = vrot.slane %v2269_v46, 1 }
 0x20a   :  { %v2271_v15 = vadd.f32 %v2270_v21, %v2269_v46 }
 0x20c   :  { %v2326_v12 = vsel %vm504_vm7, %v2271_v15, %v2325_v28 }
 0x20d   :  { %v2328_v47 = vmul.f32 %v3671_v45, %v2326_v12  ;;  %v2368_v45 = vld [vmem:[%s3863_s10 + $0x1] sm:$0x1] }
 0x20e   :  { %2385 = vmatmul.f32.vlgmr.msrb.gmra.mxu3 %v2368_v45 }
 0x20f   :  { %2329 = vadd.xlane.f32.xlu1 %v2328_v47 }
 0x21e   :  { %s3155_s14 = spop %3154 }
 0x21f   :  { %v2411_v41 = vstv %s3155_s14 }
 0x282   :  { %v2330_v56 = vpop.xlane.xlu1 %2329 }
 0x283   :  { %v2331_v31 = vmul.f32 0.17677669, %v2330_v56 }
 0x285   :  { %v2333_v57 = vmax.f32 %v2332_v2, %v2331_v31 }
 0x287   :  { %v2334_v19 = vsub.f32 %v2291_v29, %v2333_v57  ;;  %v2337_v48 = vsub.f32 %v2311_v27, %v2333_v57  ;;  %v2340_v60 = vsub.f32 %v2331_v31, %v2333_v57 }
 0x289   :  { %v2335_v61 = vmul.f32 1.442695, %v2334_v19  ;;  %v2338_v32 = vmul.f32 1.442695, %v2337_v48  ;;  %v2341_v53 = vmul.f32 1.442695, %v2340_v60 }
 0x28b   :  { %3223 = vpow2.f32 %v2335_v61 }
 0x28c   :  { %3225 = vpow2.f32 %v2338_v32 }
 0x28d   :  { %3227 = vpow2.f32 %v2341_v53 }
 0x291   :  { %v3224_v9 = vpop.eup %3223  ;;  %v2386_v24 = vpop.f32.mrf.mxu3 }
 0x292   :  { %v3226_v11 = vpop.eup %3225 }
 0x293   :  { %v2343_v4 = vadd.f32 %v3226_v11, %v3224_v9  ;;  %v3228_v42 = vpop.eup %3227 }
 0x295   :  { %v2344_v14 = vadd.f32 %v3228_v42, %v2343_v4 }
 0x297   :  { %3229 = vrcp.f32 %v2344_v14  ;;  %v2356_v40 = vand.u32 2147483648, %v2344_v14  ;;  %v2354_v26 = vand.u32 2147483647, %v2344_v14  ;;  %vm2350_vm10 = vweird.f32 %v2344_v14 }
 0x299   :  { %v2357_v16 = vor.u32 1.1754944e-38, %v2356_v40  ;;  %vm2355_vm12 = vcmp.eq.f32.partialorder %v2354_v26, 8.507059e+37 }
 0x29d   :  { %v3230_v34 = vpop.eup %3229 }
 0x29e   :  { %v2346_v33 = vmul.f32 %v3230_v34, %v2344_v14  ;;  %vm2351_vm9 = vweird.f32 %v3230_v34 }
 0x29f   :  { %vm2352_vm11 = vmor %vm2350_vm10, %vm2351_vm9 }
 0x2a0   :  { %v2347_v35 = vsub.f32 1.0, %v2346_v33 }
 0x2a2   :  { %v2348_v58 = vmul.f32 %v3230_v34, %v2347_v35 }
 0x2a4   :  { %v2349_v3 = vadd.f32 %v3230_v34, %v2348_v58 }
 0x2a6   :  { %v2353_v25 = vsel %vm2352_vm11, %v3230_v34, %v2349_v3 }
 0x2a7   :  { %v2358_v44 = vsel %vm2355_vm12, %v2357_v16, %v2353_v25 }
 0x2a8   :  { %v2364_v36 = vmul.f32 %v3228_v42, %v2358_v44  ;;  %v2359_v23 = vmul.f32 %v3224_v9, %v2358_v44  ;;  %v2361_v52 = vmul.f32 %v3226_v11, %v2358_v44 }
 0x2aa   :  { %v2360_v63 = vmul.f32 %v2359_v23, %v3679_v1  ;;  %v2362_v54 = vmul.f32 %v2361_v52, %v3698_v20  ;;  %v2365_v50 = vmul.f32 %v2364_v36, %v2326_v12 }
 0x2ac   :  { %v2363_v59 = vadd.f32 %v2362_v54, %v2360_v63 }
 0x2ae   :  { %v2366_v0 = vadd.f32 %v2365_v50, %v2363_v59 }
 0x2b0   :  { %2404 = vmatpush.xpose.msrb.mxu1 %v2366_v0 }
 0x2b3   :  { %2405 = vmatmul.f32.vlgmr.msrb.gmra.mxu1 %v2367_v62 }
 0x330   :  { %v2406_v51 = vpop.f32.mrf.mxu1 }
 0x331   :  { %v2407_v1 = vadd.f32 %v2406_v51, %v2386_v24 }
 0x333   :  { %v2412_v20 = vadd.f32 %v2411_v41, %v2407_v1 }
 0x335   :  { %2414 = vst.msk [vmem:[#allocation14] sm:$0x1] %vm2413_vm13, %v2412_v20 }
 0x336   :  { %2425 = dma.vmem_to_hbm [thread:$0]  %s2421_s16, 16, %s2423_s13, [#allocation5]  }
 0x337   :  { %3407 = dma.done.wait [#allocation5], 16  }
 0x338   :  { %3408 = vsyncadd [#allocation5], 4294967280 }
 0x339   :  { %2430 = vsyncpa [#allocation4], 1 }
 0x33a   :  { %2431 = vsyncpa [#allocation7], 1 }
 0x33b   :  { %2432 = vsyncpa [#allocation10], 1 }
 0x33c   :  { %2433 = vsyncpa [#allocation13], 1 }
 0x33d   :  { %2434 = vsyncpa [#allocation5], 1 }

</bundles_post_ra>
